<compile_context>
chip_gen: v6e
topology: v6e:2x2x1
jax: 0.10.0
libtpu: 0.0.40
codegen_flags: <defaults>
</compile_context>

<pallas_src>
import functools

import jax
import jax.numpy as jnp
from jax.experimental import pallas as pl
from jax.experimental.pallas import tpu as pltpu


# ----------------------------------------------------------------------------- config
BATCH = 2
SEQ = 8
HIDDEN = 32
N_HEADS = 4
HEAD_DIM = HIDDEN // N_HEADS
FFN = 64
N_LAYERS = 2
VOCAB = 100
MAX_POS = 128
TYPE_VOCAB = 2
LN_EPS = 1e-12


# ----------------------------------------------------------------------------- helpers
def _layernorm(x, g, b, eps=LN_EPS):
    mu = jnp.mean(x, axis=-1, keepdims=True)
    var = jnp.mean((x - mu) ** 2, axis=-1, keepdims=True)
    return (x - mu) * jax.lax.rsqrt(var + eps) * g + b


def _bf16(x):
    return x.astype(jnp.bfloat16)


# ----------------------------------------------------------------------------- kernel
def _sts_bert_kernel(
    emb_ref,          # [B*S, H]  word-embedding gather (f32)
    pos_type_ref,     # [S, H]    precomputed positional + segment-A embedding (f32)
    mask_bias_ref,    # [B, 1, S] additive key mask (0 attended / -1e4 masked)
    mask_pool_ref,    # [B*S, 1]  float mask for mean pooling
    emb_ln_g_ref, emb_ln_b_ref,            # [1, H]
    wqkv_ref, bqkv_ref,                    # [L, H, 3H] bf16, [L, 1, 3H] f32
    wo_ref, bo_ref,                        # [L, H, H]  bf16, [L, 1, H]  f32
    ln1_g_ref, ln1_b_ref,                  # [L, 1, H]
    w1_ref, b1_ref,                        # [L, H, F]  bf16, [L, 1, F]  f32
    w2_ref, b2_ref,                        # [L, F, H]  bf16, [L, 1, H]  f32
    ln2_g_ref, ln2_b_ref,                  # [L, 1, H]
    tok_out_ref,      # [B*S, H]
    sent_out_ref,     # [B, H]
    *, batch, seq, n_heads, n_layers,
):
    BS, H = emb_ref.shape
    head_dim = H // n_heads

    # --- embeddings: word gather (JAX glue) + fused positional/segment add, then LayerNorm ---
    emb = (emb_ref[...].reshape(batch, seq, H) + pos_type_ref[...][None]).reshape(BS, H)
    hidden = _layernorm(emb, emb_ln_g_ref[...], emb_ln_b_ref[...])

    # Additive KEY mask, broadcast ONCE and reused across all layers & heads.
    mask_b = jnp.broadcast_to(mask_bias_ref[...], (batch, seq, seq))

    for l in range(n_layers):                                   # static unroll (L=2)
        # ---- fused QKV projection (1/sqrt(Dh) already folded into the Q weights) ----
        qkv = jnp.dot(_bf16(hidden), wqkv_ref[l],
                      preferred_element_type=jnp.float32) + bqkv_ref[l]
        qkv_bf = _bf16(qkv)
        q3 = qkv_bf[:, 0 * H:1 * H].reshape(batch, seq, H)      # free leading-dim split
        k3 = qkv_bf[:, 1 * H:2 * H].reshape(batch, seq, H)
        v3 = qkv_bf[:, 2 * H:3 * H].reshape(batch, seq, H)

        # ---- per-head attention; heads are static lane slices (no per-head reshapes) ----
        ctx_heads = []
        for h in range(n_heads):                                # static unroll (nH=4)
            lo, hi = h * head_dim, (h + 1) * head_dim
            s = jnp.einsum("bqd,bkd->bqk", q3[:, :, lo:hi], k3[:, :, lo:hi],
                           preferred_element_type=jnp.float32)
            s = s + mask_b
            s = s - jnp.max(s, axis=-1, keepdims=True)
            p = jnp.exp(s)
            p = p * pl.reciprocal(jnp.sum(p, axis=-1, keepdims=True), approx=True)
            ctx_heads.append(
                jnp.einsum("bqk,bkd->bqd", _bf16(p), v3[:, :, lo:hi],
                           preferred_element_type=jnp.float32))

        # Heads concatenated in their natural lane positions -> ONE output-projection matmul.
        ctx = jnp.concatenate(ctx_heads, axis=-1).reshape(BS, H)
        attn_out = jnp.dot(_bf16(ctx), wo_ref[l],
                           preferred_element_type=jnp.float32) + bo_ref[l]
        hidden = _layernorm(attn_out + hidden, ln1_g_ref[l], ln1_b_ref[l])

        # ---- FFN ----
        ff = jnp.dot(_bf16(hidden), w1_ref[l],
                     preferred_element_type=jnp.float32) + b1_ref[l]
        # TODO(synk): HF BERT uses exact erf-GELU; tanh approximation used here (tiny mismatch).
        ff = jax.nn.gelu(ff, approximate=True)
        ff = jnp.dot(_bf16(ff), w2_ref[l],
                     preferred_element_type=jnp.float32) + b2_ref[l]
        hidden = _layernorm(ff + hidden, ln2_g_ref[l], ln2_b_ref[l])

    tok_out_ref[...] = hidden

    # --- masked mean pooling (sentence_transformers Pooling, mean mode), vectorized ---
    mask_pool = mask_pool_ref[...]                              # [B*S, 1]
    ssum = jnp.sum((hidden * mask_pool).reshape(batch, seq, H), axis=1)   # [B, H]
    cnt = jnp.sum(mask_pool.reshape(batch, seq, 1), axis=1)               # [B, 1]
    sent_out_ref[...] = ssum / jnp.maximum(cnt, 1e-9)           # exact divide, single store


# ----------------------------------------------------------------------------- params
def init_params(key):
    """Per-layer weights stacked on a leading [L] axis so the whole encoder is one
    pallas_call (weights DMA'd once). Weight matrices are stored bf16 (MXU operands);
    biases / LN params stay f32 and are pre-shaped [L, 1, N]."""
    def nrm(k, shape, scale=0.02):
        return scale * jax.random.normal(k, shape, dtype=jnp.float32)

    keys = iter(jax.random.split(key, 8))
    word_emb = nrm(next(keys), (VOCAB, HIDDEN))
    pos_emb = nrm(next(keys), (MAX_POS, HIDDEN))
    type_emb = nrm(next(keys), (TYPE_VOCAB, HIDDEN))

    wqkv = nrm(next(keys), (N_LAYERS, HIDDEN, 3 * HIDDEN))      # packed [Wq|Wk|Wv]
    bqkv = jnp.zeros((N_LAYERS, 1, 3 * HIDDEN), jnp.float32)
    # Fold the 1/sqrt(head_dim) attention scale into the Q projection (weight-side precompute).
    scale = 1.0 / (HEAD_DIM ** 0.5)
    wqkv = wqkv.at[:, :, :HIDDEN].multiply(scale)
    bqkv = bqkv.at[:, :, :HIDDEN].multiply(scale)

    return {
        "word_emb": word_emb,
        # token_type_ids is always 0 for this model -> positional + segment-A embedding,
        # precomputed once at init and added inside the kernel.
        # TODO(synk): supply real token_type_ids if segment-B inputs are ever used.
        "pos_type_emb": pos_emb + type_emb[0][None, :],
        "emb_ln_g": jnp.ones((1, HIDDEN), jnp.float32),
        "emb_ln_b": jnp.zeros((1, HIDDEN), jnp.float32),
        "wqkv": wqkv.astype(jnp.bfloat16),
        "bqkv": bqkv,
        "wo": nrm(next(keys), (N_LAYERS, HIDDEN, HIDDEN)).astype(jnp.bfloat16),
        "bo": jnp.zeros((N_LAYERS, 1, HIDDEN), jnp.float32),
        "ln1_g": jnp.ones((N_LAYERS, 1, HIDDEN), jnp.float32),
        "ln1_b": jnp.zeros((N_LAYERS, 1, HIDDEN), jnp.float32),
        "w1": nrm(next(keys), (N_LAYERS, HIDDEN, FFN)).astype(jnp.bfloat16),
        "b1": jnp.zeros((N_LAYERS, 1, FFN), jnp.float32),
        "w2": nrm(next(keys), (N_LAYERS, FFN, HIDDEN)).astype(jnp.bfloat16),
        "b2": jnp.zeros((N_LAYERS, 1, HIDDEN), jnp.float32),
        "ln2_g": jnp.ones((N_LAYERS, 1, HIDDEN), jnp.float32),
        "ln2_b": jnp.zeros((N_LAYERS, 1, HIDDEN), jnp.float32),
    }


# ----------------------------------------------------------------------------- model
def sts_bert_forward(params, input_ids, attention_mask):
    """Equivalent of STSBertModel.forward: BERT encoder + mean pooling.

    Returns 'token_embeddings' [B, S, H] and 'sentence_embedding' [B, H].
    Everything after the single embedding-table gather runs in one fused Pallas kernel.
    """
    B, S = input_ids.shape

    # --- embedding glue: ONE table gather (pos/type add is fused into the kernel) ---
    emb2d = jnp.take(params["word_emb"], input_ids.reshape(-1), axis=0)   # [B*S, H] f32
    pos_type = params["pos_type_emb"][:S]                                 # [S, H]   f32

    maskf = attention_mask.astype(jnp.float32)
    mask_bias = ((1.0 - maskf) * -10000.0).reshape(B, 1, S)   # BERT additive key mask
    mask_pool = maskf.reshape(B * S, 1)

    kernel = functools.partial(_sts_bert_kernel, batch=B, seq=S,
                               n_heads=N_HEADS, n_layers=N_LAYERS)

    # TODO(synk): at real BERT-base sizes, stream per-layer weights with grid=(N_LAYERS,)
    # + BlockSpec index_map (v7x 64 MiB VMEM) and add a batch-tile 'parallel' grid axis
    # for the second v7x TensorCore; unnecessary at these toy shapes.
    tok2d, sent = pl.pallas_call(
        kernel,
        out_shape=(jax.ShapeDtypeStruct((B * S, HIDDEN), jnp.float32),
                   jax.ShapeDtypeStruct((B, HIDDEN), jnp.float32)),
        compiler_params=pltpu.CompilerParams(vmem_limit_bytes=32 * 1024 * 1024),
    )(emb2d, pos_type, mask_bias, mask_pool,
      params["emb_ln_g"], params["emb_ln_b"],
      params["wqkv"], params["bqkv"], params["wo"], params["bo"],
      params["ln1_g"], params["ln1_b"],
      params["w1"], params["b1"], params["w2"], params["b2"],
      params["ln2_g"], params["ln2_b"])

    return {
        "token_embeddings": tok2d.reshape(B, S, HIDDEN),
        "sentence_embedding": sent,
        "attention_mask": attention_mask,
    }


# ----------------------------------------------------------------------------- main
if __name__ == "__main__":
    key = jax.random.PRNGKey(0)
    k_param, k_ids = jax.random.split(key)

    params = init_params(k_param)
    input_ids = jax.random.randint(k_ids, (BATCH, SEQ), 0, VOCAB, dtype=jnp.int32)
    attention_mask = jnp.array(
        [[1] * SEQ, [1] * (SEQ - 3) + [0] * 3], dtype=jnp.int32)

    forward = jax.jit(sts_bert_forward)
    out = forward(params, input_ids, attention_mask)
    jax.block_until_ready(out["sentence_embedding"])
    jax.block_until_ready(out["token_embeddings"])

    assert out["token_embeddings"].shape == (BATCH, SEQ, HIDDEN)
    assert out["sentence_embedding"].shape == (BATCH, HIDDEN)
    assert bool(jnp.all(jnp.isfinite(out["token_embeddings"])))
    assert bool(jnp.all(jnp.isfinite(out["sentence_embedding"])))

    print("KERNEL_OK")
</pallas_src>

<mosaic_0001>
module attributes {stable_mosaic.version = 11 : i64} {
  func.func @_sts_bert_kernel(%arg0: memref<16x32xf32, #tpu.memory_space<vmem>>, %arg1: memref<8x32xf32, #tpu.memory_space<vmem>>, %arg2: memref<2x1x8xf32, #tpu.memory_space<vmem>>, %arg3: memref<16x1xf32, #tpu.memory_space<vmem>>, %arg4: memref<1x32xf32, #tpu.memory_space<vmem>>, %arg5: memref<1x32xf32, #tpu.memory_space<vmem>>, %arg6: memref<2x32x96xbf16, #tpu.memory_space<vmem>>, %arg7: memref<2x1x96xf32, #tpu.memory_space<vmem>>, %arg8: memref<2x32x32xbf16, #tpu.memory_space<vmem>>, %arg9: memref<2x1x32xf32, #tpu.memory_space<vmem>>, %arg10: memref<2x1x32xf32, #tpu.memory_space<vmem>>, %arg11: memref<2x1x32xf32, #tpu.memory_space<vmem>>, %arg12: memref<2x32x64xbf16, #tpu.memory_space<vmem>>, %arg13: memref<2x1x64xf32, #tpu.memory_space<vmem>>, %arg14: memref<2x64x32xbf16, #tpu.memory_space<vmem>>, %arg15: memref<2x1x32xf32, #tpu.memory_space<vmem>>, %arg16: memref<2x1x32xf32, #tpu.memory_space<vmem>>, %arg17: memref<2x1x32xf32, #tpu.memory_space<vmem>>, %arg18: memref<16x32xf32, #tpu.memory_space<vmem>>, %arg19: memref<2x32xf32, #tpu.memory_space<vmem>>) attributes {dimension_semantics = [], scalar_prefetch = 0 : i64, scratch_operands = 0 : i64, tpu.core_type = #tpu.core_type<tc>} {
    %c0 = arith.constant 0 : index
    %c0_0 = arith.constant 0 : index
    %0 = vector.load %arg0[%c0, %c0_0] : memref<16x32xf32, #tpu.memory_space<vmem>>, vector<16x32xf32>
    %1 = vector.shape_cast %0 : vector<16x32xf32> to vector<2x8x32xf32>
    %c0_1 = arith.constant 0 : index
    %c0_2 = arith.constant 0 : index
    %2 = vector.load %arg1[%c0_1, %c0_2] : memref<8x32xf32, #tpu.memory_space<vmem>>, vector<8x32xf32>
    %3 = vector.shape_cast %2 : vector<8x32xf32> to vector<1x8x32xf32>
    %4 = vector.broadcast %3 : vector<1x8x32xf32> to vector<2x8x32xf32>
    %5 = arith.addf %1, %4 : vector<2x8x32xf32>
    %6 = vector.shape_cast %5 : vector<2x8x32xf32> to vector<16x32xf32>
    %c0_3 = arith.constant 0 : index
    %c0_4 = arith.constant 0 : index
    %7 = vector.load %arg4[%c0_3, %c0_4] : memref<1x32xf32, #tpu.memory_space<vmem>>, vector<1x32xf32>
    %c0_5 = arith.constant 0 : index
    %c0_6 = arith.constant 0 : index
    %8 = vector.load %arg5[%c0_5, %c0_6] : memref<1x32xf32, #tpu.memory_space<vmem>>, vector<1x32xf32>
    %cst = arith.constant dense<0.000000e+00> : vector<16xf32>
    %9 = vector.multi_reduction <add>, %6, %cst [1] : vector<16x32xf32> to vector<16xf32>
    %10 = vector.shape_cast %9 : vector<16xf32> to vector<16x1xf32>
    %cst_7 = arith.constant 3.200000e+01 : f32
    %11 = vector.broadcast %cst_7 : f32 to vector<16x1xf32>
    %12 = arith.divf %10, %11 : vector<16x1xf32>
    %13 = vector.broadcast %12 : vector<16x1xf32> to vector<16x32xf32>
    %14 = arith.subf %6, %13 : vector<16x32xf32>
    %15 = arith.mulf %14, %14 : vector<16x32xf32>
    %cst_8 = arith.constant dense<0.000000e+00> : vector<16xf32>
    %16 = vector.multi_reduction <add>, %15, %cst_8 [1] : vector<16x32xf32> to vector<16xf32>
    %17 = vector.shape_cast %16 : vector<16xf32> to vector<16x1xf32>
    %cst_9 = arith.constant 3.200000e+01 : f32
    %18 = vector.broadcast %cst_9 : f32 to vector<16x1xf32>
    %19 = arith.divf %17, %18 : vector<16x1xf32>
    %20 = vector.broadcast %12 : vector<16x1xf32> to vector<16x32xf32>
    %21 = arith.subf %6, %20 : vector<16x32xf32>
    %cst_10 = arith.constant 9.99999996E-13 : f32
    %22 = vector.broadcast %cst_10 : f32 to vector<16x1xf32>
    %23 = arith.addf %19, %22 : vector<16x1xf32>
    %24 = math.rsqrt %23 : vector<16x1xf32>
    %25 = vector.broadcast %24 : vector<16x1xf32> to vector<16x32xf32>
    %26 = arith.mulf %21, %25 : vector<16x32xf32>
    %27 = vector.broadcast %7 : vector<1x32xf32> to vector<16x32xf32>
    %28 = arith.mulf %26, %27 : vector<16x32xf32>
    %29 = vector.broadcast %8 : vector<1x32xf32> to vector<16x32xf32>
    %30 = arith.addf %28, %29 : vector<16x32xf32>
    %c0_11 = arith.constant 0 : index
    %c0_12 = arith.constant 0 : index
    %c0_13 = arith.constant 0 : index
    %31 = vector.load %arg2[%c0_11, %c0_12, %c0_13] : memref<2x1x8xf32, #tpu.memory_space<vmem>>, vector<2x1x8xf32>
    %32 = vector.shape_cast %31 : vector<2x1x8xf32> to vector<2x1x8xf32>
    %33 = vector.broadcast %32 : vector<2x1x8xf32> to vector<2x8x8xf32>
    %34 = arith.truncf %30 : vector<16x32xf32> to vector<16x32xbf16>
    %c0_14 = arith.constant 0 : index
    %c0_15 = arith.constant 0 : index
    %c0_16 = arith.constant 0 : index
    %35 = vector.load %arg6[%c0_14, %c0_15, %c0_16] : memref<2x32x96xbf16, #tpu.memory_space<vmem>>, vector<1x32x96xbf16>
    %36 = vector.shape_cast %35 : vector<1x32x96xbf16> to vector<32x96xbf16>
    %cst_17 = arith.constant dense<0.000000e+00> : vector<16x96xf32>
    %37 = tpu.matmul %34, %36, %cst_17 {dimension_numbers = #tpu.dot_dimension_numbers<[1], [0], [0], [1], [0, 0, 1, 1], [], []>} : vector<16x32xbf16>, vector<32x96xbf16>, vector<16x96xf32> -> vector<16x96xf32>
    %c0_18 = arith.constant 0 : index
    %c0_19 = arith.constant 0 : index
    %c0_20 = arith.constant 0 : index
    %38 = vector.load %arg7[%c0_18, %c0_19, %c0_20] : memref<2x1x96xf32, #tpu.memory_space<vmem>>, vector<1x1x96xf32>
    %39 = vector.shape_cast %38 : vector<1x1x96xf32> to vector<1x96xf32>
    %40 = vector.broadcast %39 : vector<1x96xf32> to vector<16x96xf32>
    %41 = arith.addf %37, %40 : vector<16x96xf32>
    %42 = arith.truncf %41 : vector<16x96xf32> to vector<16x96xbf16>
    %43 = vector.extract_strided_slice %42 {offsets = [0, 0], sizes = [16, 32], strides = [1, 1]} : vector<16x96xbf16> to vector<16x32xbf16>
    %44 = vector.shape_cast %43 : vector<16x32xbf16> to vector<2x8x32xbf16>
    %45 = vector.extract_strided_slice %42 {offsets = [0, 32], sizes = [16, 32], strides = [1, 1]} : vector<16x96xbf16> to vector<16x32xbf16>
    %46 = vector.shape_cast %45 : vector<16x32xbf16> to vector<2x8x32xbf16>
    %47 = vector.extract_strided_slice %42 {offsets = [0, 64], sizes = [16, 32], strides = [1, 1]} : vector<16x96xbf16> to vector<16x32xbf16>
    %48 = vector.shape_cast %47 : vector<16x32xbf16> to vector<2x8x32xbf16>
    %49 = vector.extract_strided_slice %44 {offsets = [0, 0, 0], sizes = [2, 8, 8], strides = [1, 1, 1]} : vector<2x8x32xbf16> to vector<2x8x8xbf16>
    %50 = vector.extract_strided_slice %46 {offsets = [0, 0, 0], sizes = [2, 8, 8], strides = [1, 1, 1]} : vector<2x8x32xbf16> to vector<2x8x8xbf16>
    "tpu.trace_start"() <{level = 10 : i32, message = "bqd,bkd->bqk"}> : () -> ()
    %cst_21 = arith.constant dense<0.000000e+00> : vector<2x8x8xf32>
    %51 = tpu.matmul %49, %50, %cst_21 {dimension_numbers = #tpu.dot_dimension_numbers<[2], [2], [1], [1], [0, 0, 0, 1, 1, 1], [0], [0]>} : vector<2x8x8xbf16>, vector<2x8x8xbf16>, vector<2x8x8xf32> -> vector<2x8x8xf32>
    "tpu.trace_stop"() : () -> ()
    %52 = arith.addf %51, %33 : vector<2x8x8xf32>
    %cst_22 = arith.constant dense<0xFF800000> : vector<2x8xf32>
    %53 = vector.multi_reduction <maximumf>, %52, %cst_22 [2] : vector<2x8x8xf32> to vector<2x8xf32>
    %54 = vector.shape_cast %53 : vector<2x8xf32> to vector<2x8x1xf32>
    %55 = vector.broadcast %54 : vector<2x8x1xf32> to vector<2x8x8xf32>
    %56 = arith.subf %52, %55 : vector<2x8x8xf32>
    %57 = math.exp %56 : vector<2x8x8xf32>
    %cst_23 = arith.constant dense<0.000000e+00> : vector<2x8xf32>
    %58 = vector.multi_reduction <add>, %57, %cst_23 [2] : vector<2x8x8xf32> to vector<2x8xf32>
    %59 = vector.shape_cast %58 : vector<2x8xf32> to vector<2x8x1xf32>
    %60 = tpu.reciprocal %59 {approx = true} : vector<2x8x1xf32> -> vector<2x8x1xf32>
    %61 = vector.broadcast %60 : vector<2x8x1xf32> to vector<2x8x8xf32>
    %62 = arith.mulf %57, %61 : vector<2x8x8xf32>
    %63 = arith.truncf %62 : vector<2x8x8xf32> to vector<2x8x8xbf16>
    %64 = vector.extract_strided_slice %48 {offsets = [0, 0, 0], sizes = [2, 8, 8], strides = [1, 1, 1]} : vector<2x8x32xbf16> to vector<2x8x8xbf16>
    "tpu.trace_start"() <{level = 10 : i32, message = "bqk,bkd->bqd"}> : () -> ()
    %cst_24 = arith.constant dense<0.000000e+00> : vector<2x8x8xf32>
    %65 = tpu.matmul %63, %64, %cst_24 {dimension_numbers = #tpu.dot_dimension_numbers<[2], [1], [1], [2], [0, 0, 0, 1, 1, 2], [0], [0]>} : vector<2x8x8xbf16>, vector<2x8x8xbf16>, vector<2x8x8xf32> -> vector<2x8x8xf32>
    "tpu.trace_stop"() : () -> ()
    %66 = vector.extract_strided_slice %44 {offsets = [0, 0, 8], sizes = [2, 8, 8], strides = [1, 1, 1]} : vector<2x8x32xbf16> to vector<2x8x8xbf16>
    %67 = vector.extract_strided_slice %46 {offsets = [0, 0, 8], sizes = [2, 8, 8], strides = [1, 1, 1]} : vector<2x8x32xbf16> to vector<2x8x8xbf16>
    "tpu.trace_start"() <{level = 10 : i32, message = "bqd,bkd->bqk"}> : () -> ()
    %cst_25 = arith.constant dense<0.000000e+00> : vector<2x8x8xf32>
    %68 = tpu.matmul %66, %67, %cst_25 {dimension_numbers = #tpu.dot_dimension_numbers<[2], [2], [1], [1], [0, 0, 0, 1, 1, 1], [0], [0]>} : vector<2x8x8xbf16>, vector<2x8x8xbf16>, vector<2x8x8xf32> -> vector<2x8x8xf32>
    "tpu.trace_stop"() : () -> ()
    %69 = arith.addf %68, %33 : vector<2x8x8xf32>
    %cst_26 = arith.constant dense<0xFF800000> : vector<2x8xf32>
    %70 = vector.multi_reduction <maximumf>, %69, %cst_26 [2] : vector<2x8x8xf32> to vector<2x8xf32>
    %71 = vector.shape_cast %70 : vector<2x8xf32> to vector<2x8x1xf32>
    %72 = vector.broadcast %71 : vector<2x8x1xf32> to vector<2x8x8xf32>
    %73 = arith.subf %69, %72 : vector<2x8x8xf32>
    %74 = math.exp %73 : vector<2x8x8xf32>
    %cst_27 = arith.constant dense<0.000000e+00> : vector<2x8xf32>
    %75 = vector.multi_reduction <add>, %74, %cst_27 [2] : vector<2x8x8xf32> to vector<2x8xf32>
    %76 = vector.shape_cast %75 : vector<2x8xf32> to vector<2x8x1xf32>
    %77 = tpu.reciprocal %76 {approx = true} : vector<2x8x1xf32> -> vector<2x8x1xf32>
    %78 = vector.broadcast %77 : vector<2x8x1xf32> to vector<2x8x8xf32>
    %79 = arith.mulf %74, %78 : vector<2x8x8xf32>
    %80 = arith.truncf %79 : vector<2x8x8xf32> to vector<2x8x8xbf16>
    %81 = vector.extract_strided_slice %48 {offsets = [0, 0, 8], sizes = [2, 8, 8], strides = [1, 1, 1]} : vector<2x8x32xbf16> to vector<2x8x8xbf16>
    "tpu.trace_start"() <{level = 10 : i32, message = "bqk,bkd->bqd"}> : () -> ()
    %cst_28 = arith.constant dense<0.000000e+00> : vector<2x8x8xf32>
    %82 = tpu.matmul %80, %81, %cst_28 {dimension_numbers = #tpu.dot_dimension_numbers<[2], [1], [1], [2], [0, 0, 0, 1, 1, 2], [0], [0]>} : vector<2x8x8xbf16>, vector<2x8x8xbf16>, vector<2x8x8xf32> -> vector<2x8x8xf32>
    "tpu.trace_stop"() : () -> ()
    %83 = vector.extract_strided_slice %44 {offsets = [0, 0, 16], sizes = [2, 8, 8], strides = [1, 1, 1]} : vector<2x8x32xbf16> to vector<2x8x8xbf16>
    %84 = vector.extract_strided_slice %46 {offsets = [0, 0, 16], sizes = [2, 8, 8], strides = [1, 1, 1]} : vector<2x8x32xbf16> to vector<2x8x8xbf16>
    "tpu.trace_start"() <{level = 10 : i32, message = "bqd,bkd->bqk"}> : () -> ()
    %cst_29 = arith.constant dense<0.000000e+00> : vector<2x8x8xf32>
    %85 = tpu.matmul %83, %84, %cst_29 {dimension_numbers = #tpu.dot_dimension_numbers<[2], [2], [1], [1], [0, 0, 0, 1, 1, 1], [0], [0]>} : vector<2x8x8xbf16>, vector<2x8x8xbf16>, vector<2x8x8xf32> -> vector<2x8x8xf32>
    "tpu.trace_stop"() : () -> ()
    %86 = arith.addf %85, %33 : vector<2x8x8xf32>
    %cst_30 = arith.constant dense<0xFF800000> : vector<2x8xf32>
    %87 = vector.multi_reduction <maximumf>, %86, %cst_30 [2] : vector<2x8x8xf32> to vector<2x8xf32>
    %88 = vector.shape_cast %87 : vector<2x8xf32> to vector<2x8x1xf32>
    %89 = vector.broadcast %88 : vector<2x8x1xf32> to vector<2x8x8xf32>
    %90 = arith.subf %86, %89 : vector<2x8x8xf32>
    %91 = math.exp %90 : vector<2x8x8xf32>
    %cst_31 = arith.constant dense<0.000000e+00> : vector<2x8xf32>
    %92 = vector.multi_reduction <add>, %91, %cst_31 [2] : vector<2x8x8xf32> to vector<2x8xf32>
    %93 = vector.shape_cast %92 : vector<2x8xf32> to vector<2x8x1xf32>
    %94 = tpu.reciprocal %93 {approx = true} : vector<2x8x1xf32> -> vector<2x8x1xf32>
    %95 = vector.broadcast %94 : vector<2x8x1xf32> to vector<2x8x8xf32>
    %96 = arith.mulf %91, %95 : vector<2x8x8xf32>
    %97 = arith.truncf %96 : vector<2x8x8xf32> to vector<2x8x8xbf16>
    %98 = vector.extract_strided_slice %48 {offsets = [0, 0, 16], sizes = [2, 8, 8], strides = [1, 1, 1]} : vector<2x8x32xbf16> to vector<2x8x8xbf16>
    "tpu.trace_start"() <{level = 10 : i32, message = "bqk,bkd->bqd"}> : () -> ()
    %cst_32 = arith.constant dense<0.000000e+00> : vector<2x8x8xf32>
    %99 = tpu.matmul %97, %98, %cst_32 {dimension_numbers = #tpu.dot_dimension_numbers<[2], [1], [1], [2], [0, 0, 0, 1, 1, 2], [0], [0]>} : vector<2x8x8xbf16>, vector<2x8x8xbf16>, vector<2x8x8xf32> -> vector<2x8x8xf32>
    "tpu.trace_stop"() : () -> ()
    %100 = vector.extract_strided_slice %44 {offsets = [0, 0, 24], sizes = [2, 8, 8], strides = [1, 1, 1]} : vector<2x8x32xbf16> to vector<2x8x8xbf16>
    %101 = vector.extract_strided_slice %46 {offsets = [0, 0, 24], sizes = [2, 8, 8], strides = [1, 1, 1]} : vector<2x8x32xbf16> to vector<2x8x8xbf16>
    "tpu.trace_start"() <{level = 10 : i32, message = "bqd,bkd->bqk"}> : () -> ()
    %cst_33 = arith.constant dense<0.000000e+00> : vector<2x8x8xf32>
    %102 = tpu.matmul %100, %101, %cst_33 {dimension_numbers = #tpu.dot_dimension_numbers<[2], [2], [1], [1], [0, 0, 0, 1, 1, 1], [0], [0]>} : vector<2x8x8xbf16>, vector<2x8x8xbf16>, vector<2x8x8xf32> -> vector<2x8x8xf32>
    "tpu.trace_stop"() : () -> ()
    %103 = arith.addf %102, %33 : vector<2x8x8xf32>
    %cst_34 = arith.constant dense<0xFF800000> : vector<2x8xf32>
    %104 = vector.multi_reduction <maximumf>, %103, %cst_34 [2] : vector<2x8x8xf32> to vector<2x8xf32>
    %105 = vector.shape_cast %104 : vector<2x8xf32> to vector<2x8x1xf32>
    %106 = vector.broadcast %105 : vector<2x8x1xf32> to vector<2x8x8xf32>
    %107 = arith.subf %103, %106 : vector<2x8x8xf32>
    %108 = math.exp %107 : vector<2x8x8xf32>
    %cst_35 = arith.constant dense<0.000000e+00> : vector<2x8xf32>
    %109 = vector.multi_reduction <add>, %108, %cst_35 [2] : vector<2x8x8xf32> to vector<2x8xf32>
    %110 = vector.shape_cast %109 : vector<2x8xf32> to vector<2x8x1xf32>
    %111 = tpu.reciprocal %110 {approx = true} : vector<2x8x1xf32> -> vector<2x8x1xf32>
    %112 = vector.broadcast %111 : vector<2x8x1xf32> to vector<2x8x8xf32>
    %113 = arith.mulf %108, %112 : vector<2x8x8xf32>
    %114 = arith.truncf %113 : vector<2x8x8xf32> to vector<2x8x8xbf16>
    %115 = vector.extract_strided_slice %48 {offsets = [0, 0, 24], sizes = [2, 8, 8], strides = [1, 1, 1]} : vector<2x8x32xbf16> to vector<2x8x8xbf16>
    "tpu.trace_start"() <{level = 10 : i32, message = "bqk,bkd->bqd"}> : () -> ()
    %cst_36 = arith.constant dense<0.000000e+00> : vector<2x8x8xf32>
    %116 = tpu.matmul %114, %115, %cst_36 {dimension_numbers = #tpu.dot_dimension_numbers<[2], [1], [1], [2], [0, 0, 0, 1, 1, 2], [0], [0]>} : vector<2x8x8xbf16>, vector<2x8x8xbf16>, vector<2x8x8xf32> -> vector<2x8x8xf32>
    "tpu.trace_stop"() : () -> ()
    %117 = tpu.concatenate %65, %82, %99, %116 in 2 : vector<2x8x8xf32>, vector<2x8x8xf32>, vector<2x8x8xf32>, vector<2x8x8xf32> -> vector<2x8x32xf32>
    %118 = vector.shape_cast %117 : vector<2x8x32xf32> to vector<16x32xf32>
    %119 = arith.truncf %118 : vector<16x32xf32> to vector<16x32xbf16>
    %c0_37 = arith.constant 0 : index
    %c0_38 = arith.constant 0 : index
    %c0_39 = arith.constant 0 : index
    %120 = vector.load %arg8[%c0_37, %c0_38, %c0_39] : memref<2x32x32xbf16, #tpu.memory_space<vmem>>, vector<1x32x32xbf16>
    %121 = vector.shape_cast %120 : vector<1x32x32xbf16> to vector<32x32xbf16>
    %cst_40 = arith.constant dense<0.000000e+00> : vector<16x32xf32>
    %122 = tpu.matmul %119, %121, %cst_40 {dimension_numbers = #tpu.dot_dimension_numbers<[1], [0], [0], [1], [0, 0, 1, 1], [], []>} : vector<16x32xbf16>, vector<32x32xbf16>, vector<16x32xf32> -> vector<16x32xf32>
    %c0_41 = arith.constant 0 : index
    %c0_42 = arith.constant 0 : index
    %c0_43 = arith.constant 0 : index
    %123 = vector.load %arg9[%c0_41, %c0_42, %c0_43] : memref<2x1x32xf32, #tpu.memory_space<vmem>>, vector<1x1x32xf32>
    %124 = vector.shape_cast %123 : vector<1x1x32xf32> to vector<1x32xf32>
    %125 = vector.broadcast %124 : vector<1x32xf32> to vector<16x32xf32>
    %126 = arith.addf %122, %125 : vector<16x32xf32>
    %127 = arith.addf %126, %30 : vector<16x32xf32>
    %c0_44 = arith.constant 0 : index
    %c0_45 = arith.constant 0 : index
    %c0_46 = arith.constant 0 : index
    %128 = vector.load %arg10[%c0_44, %c0_45, %c0_46] : memref<2x1x32xf32, #tpu.memory_space<vmem>>, vector<1x1x32xf32>
    %129 = vector.shape_cast %128 : vector<1x1x32xf32> to vector<1x32xf32>
    %c0_47 = arith.constant 0 : index
    %c0_48 = arith.constant 0 : index
    %c0_49 = arith.constant 0 : index
    %130 = vector.load %arg11[%c0_47, %c0_48, %c0_49] : memref<2x1x32xf32, #tpu.memory_space<vmem>>, vector<1x1x32xf32>
    %131 = vector.shape_cast %130 : vector<1x1x32xf32> to vector<1x32xf32>
    %cst_50 = arith.constant dense<0.000000e+00> : vector<16xf32>
    %132 = vector.multi_reduction <add>, %127, %cst_50 [1] : vector<16x32xf32> to vector<16xf32>
    %133 = vector.shape_cast %132 : vector<16xf32> to vector<16x1xf32>
    %cst_51 = arith.constant 3.200000e+01 : f32
    %134 = vector.broadcast %cst_51 : f32 to vector<16x1xf32>
    %135 = arith.divf %133, %134 : vector<16x1xf32>
    %136 = vector.broadcast %135 : vector<16x1xf32> to vector<16x32xf32>
    %137 = arith.subf %127, %136 : vector<16x32xf32>
    %138 = arith.mulf %137, %137 : vector<16x32xf32>
    %cst_52 = arith.constant dense<0.000000e+00> : vector<16xf32>
    %139 = vector.multi_reduction <add>, %138, %cst_52 [1] : vector<16x32xf32> to vector<16xf32>
    %140 = vector.shape_cast %139 : vector<16xf32> to vector<16x1xf32>
    %cst_53 = arith.constant 3.200000e+01 : f32
    %141 = vector.broadcast %cst_53 : f32 to vector<16x1xf32>
    %142 = arith.divf %140, %141 : vector<16x1xf32>
    %143 = vector.broadcast %135 : vector<16x1xf32> to vector<16x32xf32>
    %144 = arith.subf %127, %143 : vector<16x32xf32>
    %cst_54 = arith.constant 9.99999996E-13 : f32
    %145 = vector.broadcast %cst_54 : f32 to vector<16x1xf32>
    %146 = arith.addf %142, %145 : vector<16x1xf32>
    %147 = math.rsqrt %146 : vector<16x1xf32>
    %148 = vector.broadcast %147 : vector<16x1xf32> to vector<16x32xf32>
    %149 = arith.mulf %144, %148 : vector<16x32xf32>
    %150 = vector.broadcast %129 : vector<1x32xf32> to vector<16x32xf32>
    %151 = arith.mulf %149, %150 : vector<16x32xf32>
    %152 = vector.broadcast %131 : vector<1x32xf32> to vector<16x32xf32>
    %153 = arith.addf %151, %152 : vector<16x32xf32>
    %154 = arith.truncf %153 : vector<16x32xf32> to vector<16x32xbf16>
    %c0_55 = arith.constant 0 : index
    %c0_56 = arith.constant 0 : index
    %c0_57 = arith.constant 0 : index
    %155 = vector.load %arg12[%c0_55, %c0_56, %c0_57] : memref<2x32x64xbf16, #tpu.memory_space<vmem>>, vector<1x32x64xbf16>
    %156 = vector.shape_cast %155 : vector<1x32x64xbf16> to vector<32x64xbf16>
    %cst_58 = arith.constant dense<0.000000e+00> : vector<16x64xf32>
    %157 = tpu.matmul %154, %156, %cst_58 {dimension_numbers = #tpu.dot_dimension_numbers<[1], [0], [0], [1], [0, 0, 1, 1], [], []>} : vector<16x32xbf16>, vector<32x64xbf16>, vector<16x64xf32> -> vector<16x64xf32>
    %c0_59 = arith.constant 0 : index
    %c0_60 = arith.constant 0 : index
    %c0_61 = arith.constant 0 : index
    %158 = vector.load %arg13[%c0_59, %c0_60, %c0_61] : memref<2x1x64xf32, #tpu.memory_space<vmem>>, vector<1x1x64xf32>
    %159 = vector.shape_cast %158 : vector<1x1x64xf32> to vector<1x64xf32>
    %160 = vector.broadcast %159 : vector<1x64xf32> to vector<16x64xf32>
    %161 = arith.addf %157, %160 : vector<16x64xf32>
    %162 = arith.mulf %161, %161 : vector<16x64xf32>
    %163 = arith.mulf %161, %162 : vector<16x64xf32>
    %cst_62 = arith.constant 4.471500e-02 : f32
    %164 = vector.broadcast %cst_62 : f32 to vector<16x64xf32>
    %165 = arith.mulf %164, %163 : vector<16x64xf32>
    %166 = arith.addf %161, %165 : vector<16x64xf32>
    %cst_63 = arith.constant 0.797884583 : f32
    %167 = vector.broadcast %cst_63 : f32 to vector<16x64xf32>
    %168 = arith.mulf %167, %166 : vector<16x64xf32>
    %169 = math.tanh %168 : vector<16x64xf32>
    %cst_64 = arith.constant 1.000000e+00 : f32
    %170 = vector.broadcast %cst_64 : f32 to vector<16x64xf32>
    %171 = arith.addf %170, %169 : vector<16x64xf32>
    %cst_65 = arith.constant 5.000000e-01 : f32
    %172 = vector.broadcast %cst_65 : f32 to vector<16x64xf32>
    %173 = arith.mulf %172, %171 : vector<16x64xf32>
    %174 = arith.mulf %161, %173 : vector<16x64xf32>
    %175 = arith.truncf %174 : vector<16x64xf32> to vector<16x64xbf16>
    %c0_66 = arith.constant 0 : index
    %c0_67 = arith.constant 0 : index
    %c0_68 = arith.constant 0 : index
    %176 = vector.load %arg14[%c0_66, %c0_67, %c0_68] : memref<2x64x32xbf16, #tpu.memory_space<vmem>>, vector<1x64x32xbf16>
    %177 = vector.shape_cast %176 : vector<1x64x32xbf16> to vector<64x32xbf16>
    %cst_69 = arith.constant dense<0.000000e+00> : vector<16x32xf32>
    %178 = tpu.matmul %175, %177, %cst_69 {dimension_numbers = #tpu.dot_dimension_numbers<[1], [0], [0], [1], [0, 0, 1, 1], [], []>} : vector<16x64xbf16>, vector<64x32xbf16>, vector<16x32xf32> -> vector<16x32xf32>
    %c0_70 = arith.constant 0 : index
    %c0_71 = arith.constant 0 : index
    %c0_72 = arith.constant 0 : index
    %179 = vector.load %arg15[%c0_70, %c0_71, %c0_72] : memref<2x1x32xf32, #tpu.memory_space<vmem>>, vector<1x1x32xf32>
    %180 = vector.shape_cast %179 : vector<1x1x32xf32> to vector<1x32xf32>
    %181 = vector.broadcast %180 : vector<1x32xf32> to vector<16x32xf32>
    %182 = arith.addf %178, %181 : vector<16x32xf32>
    %183 = arith.addf %182, %153 : vector<16x32xf32>
    %c0_73 = arith.constant 0 : index
    %c0_74 = arith.constant 0 : index
    %c0_75 = arith.constant 0 : index
    %184 = vector.load %arg16[%c0_73, %c0_74, %c0_75] : memref<2x1x32xf32, #tpu.memory_space<vmem>>, vector<1x1x32xf32>
    %185 = vector.shape_cast %184 : vector<1x1x32xf32> to vector<1x32xf32>
    %c0_76 = arith.constant 0 : index
    %c0_77 = arith.constant 0 : index
    %c0_78 = arith.constant 0 : index
    %186 = vector.load %arg17[%c0_76, %c0_77, %c0_78] : memref<2x1x32xf32, #tpu.memory_space<vmem>>, vector<1x1x32xf32>
    %187 = vector.shape_cast %186 : vector<1x1x32xf32> to vector<1x32xf32>
    %cst_79 = arith.constant dense<0.000000e+00> : vector<16xf32>
    %188 = vector.multi_reduction <add>, %183, %cst_79 [1] : vector<16x32xf32> to vector<16xf32>
    %189 = vector.shape_cast %188 : vector<16xf32> to vector<16x1xf32>
    %cst_80 = arith.constant 3.200000e+01 : f32
    %190 = vector.broadcast %cst_80 : f32 to vector<16x1xf32>
    %191 = arith.divf %189, %190 : vector<16x1xf32>
    %192 = vector.broadcast %191 : vector<16x1xf32> to vector<16x32xf32>
    %193 = arith.subf %183, %192 : vector<16x32xf32>
    %194 = arith.mulf %193, %193 : vector<16x32xf32>
    %cst_81 = arith.constant dense<0.000000e+00> : vector<16xf32>
    %195 = vector.multi_reduction <add>, %194, %cst_81 [1] : vector<16x32xf32> to vector<16xf32>
    %196 = vector.shape_cast %195 : vector<16xf32> to vector<16x1xf32>
    %cst_82 = arith.constant 3.200000e+01 : f32
    %197 = vector.broadcast %cst_82 : f32 to vector<16x1xf32>
    %198 = arith.divf %196, %197 : vector<16x1xf32>
    %199 = vector.broadcast %191 : vector<16x1xf32> to vector<16x32xf32>
    %200 = arith.subf %183, %199 : vector<16x32xf32>
    %cst_83 = arith.constant 9.99999996E-13 : f32
    %201 = vector.broadcast %cst_83 : f32 to vector<16x1xf32>
    %202 = arith.addf %198, %201 : vector<16x1xf32>
    %203 = math.rsqrt %202 : vector<16x1xf32>
    %204 = vector.broadcast %203 : vector<16x1xf32> to vector<16x32xf32>
    %205 = arith.mulf %200, %204 : vector<16x32xf32>
    %206 = vector.broadcast %185 : vector<1x32xf32> to vector<16x32xf32>
    %207 = arith.mulf %205, %206 : vector<16x32xf32>
    %208 = vector.broadcast %187 : vector<1x32xf32> to vector<16x32xf32>
    %209 = arith.addf %207, %208 : vector<16x32xf32>
    %210 = arith.truncf %209 : vector<16x32xf32> to vector<16x32xbf16>
    %c1 = arith.constant 1 : index
    %c0_84 = arith.constant 0 : index
    %c0_85 = arith.constant 0 : index
    %211 = vector.load %arg6[%c1, %c0_84, %c0_85] : memref<2x32x96xbf16, #tpu.memory_space<vmem>>, vector<1x32x96xbf16>
    %212 = vector.shape_cast %211 : vector<1x32x96xbf16> to vector<32x96xbf16>
    %cst_86 = arith.constant dense<0.000000e+00> : vector<16x96xf32>
    %213 = tpu.matmul %210, %212, %cst_86 {dimension_numbers = #tpu.dot_dimension_numbers<[1], [0], [0], [1], [0, 0, 1, 1], [], []>} : vector<16x32xbf16>, vector<32x96xbf16>, vector<16x96xf32> -> vector<16x96xf32>
    %c1_87 = arith.constant 1 : index
    %c0_88 = arith.constant 0 : index
    %c0_89 = arith.constant 0 : index
    %214 = vector.load %arg7[%c1_87, %c0_88, %c0_89] : memref<2x1x96xf32, #tpu.memory_space<vmem>>, vector<1x1x96xf32>
    %215 = vector.shape_cast %214 : vector<1x1x96xf32> to vector<1x96xf32>
    %216 = vector.broadcast %215 : vector<1x96xf32> to vector<16x96xf32>
    %217 = arith.addf %213, %216 : vector<16x96xf32>
    %218 = arith.truncf %217 : vector<16x96xf32> to vector<16x96xbf16>
    %219 = vector.extract_strided_slice %218 {offsets = [0, 0], sizes = [16, 32], strides = [1, 1]} : vector<16x96xbf16> to vector<16x32xbf16>
    %220 = vector.shape_cast %219 : vector<16x32xbf16> to vector<2x8x32xbf16>
    %221 = vector.extract_strided_slice %218 {offsets = [0, 32], sizes = [16, 32], strides = [1, 1]} : vector<16x96xbf16> to vector<16x32xbf16>
    %222 = vector.shape_cast %221 : vector<16x32xbf16> to vector<2x8x32xbf16>
    %223 = vector.extract_strided_slice %218 {offsets = [0, 64], sizes = [16, 32], strides = [1, 1]} : vector<16x96xbf16> to vector<16x32xbf16>
    %224 = vector.shape_cast %223 : vector<16x32xbf16> to vector<2x8x32xbf16>
    %225 = vector.extract_strided_slice %220 {offsets = [0, 0, 0], sizes = [2, 8, 8], strides = [1, 1, 1]} : vector<2x8x32xbf16> to vector<2x8x8xbf16>
    %226 = vector.extract_strided_slice %222 {offsets = [0, 0, 0], sizes = [2, 8, 8], strides = [1, 1, 1]} : vector<2x8x32xbf16> to vector<2x8x8xbf16>
    "tpu.trace_start"() <{level = 10 : i32, message = "bqd,bkd->bqk"}> : () -> ()
    %cst_90 = arith.constant dense<0.000000e+00> : vector<2x8x8xf32>
    %227 = tpu.matmul %225, %226, %cst_90 {dimension_numbers = #tpu.dot_dimension_numbers<[2], [2], [1], [1], [0, 0, 0, 1, 1, 1], [0], [0]>} : vector<2x8x8xbf16>, vector<2x8x8xbf16>, vector<2x8x8xf32> -> vector<2x8x8xf32>
    "tpu.trace_stop"() : () -> ()
    %228 = arith.addf %227, %33 : vector<2x8x8xf32>
    %cst_91 = arith.constant dense<0xFF800000> : vector<2x8xf32>
    %229 = vector.multi_reduction <maximumf>, %228, %cst_91 [2] : vector<2x8x8xf32> to vector<2x8xf32>
    %230 = vector.shape_cast %229 : vector<2x8xf32> to vector<2x8x1xf32>
    %231 = vector.broadcast %230 : vector<2x8x1xf32> to vector<2x8x8xf32>
    %232 = arith.subf %228, %231 : vector<2x8x8xf32>
    %233 = math.exp %232 : vector<2x8x8xf32>
    %cst_92 = arith.constant dense<0.000000e+00> : vector<2x8xf32>
    %234 = vector.multi_reduction <add>, %233, %cst_92 [2] : vector<2x8x8xf32> to vector<2x8xf32>
    %235 = vector.shape_cast %234 : vector<2x8xf32> to vector<2x8x1xf32>
    %236 = tpu.reciprocal %235 {approx = true} : vector<2x8x1xf32> -> vector<2x8x1xf32>
    %237 = vector.broadcast %236 : vector<2x8x1xf32> to vector<2x8x8xf32>
    %238 = arith.mulf %233, %237 : vector<2x8x8xf32>
    %239 = arith.truncf %238 : vector<2x8x8xf32> to vector<2x8x8xbf16>
    %240 = vector.extract_strided_slice %224 {offsets = [0, 0, 0], sizes = [2, 8, 8], strides = [1, 1, 1]} : vector<2x8x32xbf16> to vector<2x8x8xbf16>
    "tpu.trace_start"() <{level = 10 : i32, message = "bqk,bkd->bqd"}> : () -> ()
    %cst_93 = arith.constant dense<0.000000e+00> : vector<2x8x8xf32>
    %241 = tpu.matmul %239, %240, %cst_93 {dimension_numbers = #tpu.dot_dimension_numbers<[2], [1], [1], [2], [0, 0, 0, 1, 1, 2], [0], [0]>} : vector<2x8x8xbf16>, vector<2x8x8xbf16>, vector<2x8x8xf32> -> vector<2x8x8xf32>
    "tpu.trace_stop"() : () -> ()
    %242 = vector.extract_strided_slice %220 {offsets = [0, 0, 8], sizes = [2, 8, 8], strides = [1, 1, 1]} : vector<2x8x32xbf16> to vector<2x8x8xbf16>
    %243 = vector.extract_strided_slice %222 {offsets = [0, 0, 8], sizes = [2, 8, 8], strides = [1, 1, 1]} : vector<2x8x32xbf16> to vector<2x8x8xbf16>
    "tpu.trace_start"() <{level = 10 : i32, message = "bqd,bkd->bqk"}> : () -> ()
    %cst_94 = arith.constant dense<0.000000e+00> : vector<2x8x8xf32>
    %244 = tpu.matmul %242, %243, %cst_94 {dimension_numbers = #tpu.dot_dimension_numbers<[2], [2], [1], [1], [0, 0, 0, 1, 1, 1], [0], [0]>} : vector<2x8x8xbf16>, vector<2x8x8xbf16>, vector<2x8x8xf32> -> vector<2x8x8xf32>
    "tpu.trace_stop"() : () -> ()
    %245 = arith.addf %244, %33 : vector<2x8x8xf32>
    %cst_95 = arith.constant dense<0xFF800000> : vector<2x8xf32>
    %246 = vector.multi_reduction <maximumf>, %245, %cst_95 [2] : vector<2x8x8xf32> to vector<2x8xf32>
    %247 = vector.shape_cast %246 : vector<2x8xf32> to vector<2x8x1xf32>
    %248 = vector.broadcast %247 : vector<2x8x1xf32> to vector<2x8x8xf32>
    %249 = arith.subf %245, %248 : vector<2x8x8xf32>
    %250 = math.exp %249 : vector<2x8x8xf32>
    %cst_96 = arith.constant dense<0.000000e+00> : vector<2x8xf32>
    %251 = vector.multi_reduction <add>, %250, %cst_96 [2] : vector<2x8x8xf32> to vector<2x8xf32>
    %252 = vector.shape_cast %251 : vector<2x8xf32> to vector<2x8x1xf32>
    %253 = tpu.reciprocal %252 {approx = true} : vector<2x8x1xf32> -> vector<2x8x1xf32>
    %254 = vector.broadcast %253 : vector<2x8x1xf32> to vector<2x8x8xf32>
    %255 = arith.mulf %250, %254 : vector<2x8x8xf32>
    %256 = arith.truncf %255 : vector<2x8x8xf32> to vector<2x8x8xbf16>
    %257 = vector.extract_strided_slice %224 {offsets = [0, 0, 8], sizes = [2, 8, 8], strides = [1, 1, 1]} : vector<2x8x32xbf16> to vector<2x8x8xbf16>
    "tpu.trace_start"() <{level = 10 : i32, message = "bqk,bkd->bqd"}> : () -> ()
    %cst_97 = arith.constant dense<0.000000e+00> : vector<2x8x8xf32>
    %258 = tpu.matmul %256, %257, %cst_97 {dimension_numbers = #tpu.dot_dimension_numbers<[2], [1], [1], [2], [0, 0, 0, 1, 1, 2], [0], [0]>} : vector<2x8x8xbf16>, vector<2x8x8xbf16>, vector<2x8x8xf32> -> vector<2x8x8xf32>
    "tpu.trace_stop"() : () -> ()
    %259 = vector.extract_strided_slice %220 {offsets = [0, 0, 16], sizes = [2, 8, 8], strides = [1, 1, 1]} : vector<2x8x32xbf16> to vector<2x8x8xbf16>
    %260 = vector.extract_strided_slice %222 {offsets = [0, 0, 16], sizes = [2, 8, 8], strides = [1, 1, 1]} : vector<2x8x32xbf16> to vector<2x8x8xbf16>
    "tpu.trace_start"() <{level = 10 : i32, message = "bqd,bkd->bqk"}> : () -> ()
    %cst_98 = arith.constant dense<0.000000e+00> : vector<2x8x8xf32>
    %261 = tpu.matmul %259, %260, %cst_98 {dimension_numbers = #tpu.dot_dimension_numbers<[2], [2], [1], [1], [0, 0, 0, 1, 1, 1], [0], [0]>} : vector<2x8x8xbf16>, vector<2x8x8xbf16>, vector<2x8x8xf32> -> vector<2x8x8xf32>
    "tpu.trace_stop"() : () -> ()
    %262 = arith.addf %261, %33 : vector<2x8x8xf32>
    %cst_99 = arith.constant dense<0xFF800000> : vector<2x8xf32>
    %263 = vector.multi_reduction <maximumf>, %262, %cst_99 [2] : vector<2x8x8xf32> to vector<2x8xf32>
    %264 = vector.shape_cast %263 : vector<2x8xf32> to vector<2x8x1xf32>
    %265 = vector.broadcast %264 : vector<2x8x1xf32> to vector<2x8x8xf32>
    %266 = arith.subf %262, %265 : vector<2x8x8xf32>
    %267 = math.exp %266 : vector<2x8x8xf32>
    %cst_100 = arith.constant dense<0.000000e+00> : vector<2x8xf32>
    %268 = vector.multi_reduction <add>, %267, %cst_100 [2] : vector<2x8x8xf32> to vector<2x8xf32>
    %269 = vector.shape_cast %268 : vector<2x8xf32> to vector<2x8x1xf32>
    %270 = tpu.reciprocal %269 {approx = true} : vector<2x8x1xf32> -> vector<2x8x1xf32>
    %271 = vector.broadcast %270 : vector<2x8x1xf32> to vector<2x8x8xf32>
    %272 = arith.mulf %267, %271 : vector<2x8x8xf32>
    %273 = arith.truncf %272 : vector<2x8x8xf32> to vector<2x8x8xbf16>
    %274 = vector.extract_strided_slice %224 {offsets = [0, 0, 16], sizes = [2, 8, 8], strides = [1, 1, 1]} : vector<2x8x32xbf16> to vector<2x8x8xbf16>
    "tpu.trace_start"() <{level = 10 : i32, message = "bqk,bkd->bqd"}> : () -> ()
    %cst_101 = arith.constant dense<0.000000e+00> : vector<2x8x8xf32>
    %275 = tpu.matmul %273, %274, %cst_101 {dimension_numbers = #tpu.dot_dimension_numbers<[2], [1], [1], [2], [0, 0, 0, 1, 1, 2], [0], [0]>} : vector<2x8x8xbf16>, vector<2x8x8xbf16>, vector<2x8x8xf32> -> vector<2x8x8xf32>
    "tpu.trace_stop"() : () -> ()
    %276 = vector.extract_strided_slice %220 {offsets = [0, 0, 24], sizes = [2, 8, 8], strides = [1, 1, 1]} : vector<2x8x32xbf16> to vector<2x8x8xbf16>
    %277 = vector.extract_strided_slice %222 {offsets = [0, 0, 24], sizes = [2, 8, 8], strides = [1, 1, 1]} : vector<2x8x32xbf16> to vector<2x8x8xbf16>
    "tpu.trace_start"() <{level = 10 : i32, message = "bqd,bkd->bqk"}> : () -> ()
    %cst_102 = arith.constant dense<0.000000e+00> : vector<2x8x8xf32>
    %278 = tpu.matmul %276, %277, %cst_102 {dimension_numbers = #tpu.dot_dimension_numbers<[2], [2], [1], [1], [0, 0, 0, 1, 1, 1], [0], [0]>} : vector<2x8x8xbf16>, vector<2x8x8xbf16>, vector<2x8x8xf32> -> vector<2x8x8xf32>
    "tpu.trace_stop"() : () -> ()
    %279 = arith.addf %278, %33 : vector<2x8x8xf32>
    %cst_103 = arith.constant dense<0xFF800000> : vector<2x8xf32>
    %280 = vector.multi_reduction <maximumf>, %279, %cst_103 [2] : vector<2x8x8xf32> to vector<2x8xf32>
    %281 = vector.shape_cast %280 : vector<2x8xf32> to vector<2x8x1xf32>
    %282 = vector.broadcast %281 : vector<2x8x1xf32> to vector<2x8x8xf32>
    %283 = arith.subf %279, %282 : vector<2x8x8xf32>
    %284 = math.exp %283 : vector<2x8x8xf32>
    %cst_104 = arith.constant dense<0.000000e+00> : vector<2x8xf32>
    %285 = vector.multi_reduction <add>, %284, %cst_104 [2] : vector<2x8x8xf32> to vector<2x8xf32>
    %286 = vector.shape_cast %285 : vector<2x8xf32> to vector<2x8x1xf32>
    %287 = tpu.reciprocal %286 {approx = true} : vector<2x8x1xf32> -> vector<2x8x1xf32>
    %288 = vector.broadcast %287 : vector<2x8x1xf32> to vector<2x8x8xf32>
    %289 = arith.mulf %284, %288 : vector<2x8x8xf32>
    %290 = arith.truncf %289 : vector<2x8x8xf32> to vector<2x8x8xbf16>
    %291 = vector.extract_strided_slice %224 {offsets = [0, 0, 24], sizes = [2, 8, 8], strides = [1, 1, 1]} : vector<2x8x32xbf16> to vector<2x8x8xbf16>
    "tpu.trace_start"() <{level = 10 : i32, message = "bqk,bkd->bqd"}> : () -> ()
    %cst_105 = arith.constant dense<0.000000e+00> : vector<2x8x8xf32>
    %292 = tpu.matmul %290, %291, %cst_105 {dimension_numbers = #tpu.dot_dimension_numbers<[2], [1], [1], [2], [0, 0, 0, 1, 1, 2], [0], [0]>} : vector<2x8x8xbf16>, vector<2x8x8xbf16>, vector<2x8x8xf32> -> vector<2x8x8xf32>
    "tpu.trace_stop"() : () -> ()
    %293 = tpu.concatenate %241, %258, %275, %292 in 2 : vector<2x8x8xf32>, vector<2x8x8xf32>, vector<2x8x8xf32>, vector<2x8x8xf32> -> vector<2x8x32xf32>
    %294 = vector.shape_cast %293 : vector<2x8x32xf32> to vector<16x32xf32>
    %295 = arith.truncf %294 : vector<16x32xf32> to vector<16x32xbf16>
    %c1_106 = arith.constant 1 : index
    %c0_107 = arith.constant 0 : index
    %c0_108 = arith.constant 0 : index
    %296 = vector.load %arg8[%c1_106, %c0_107, %c0_108] : memref<2x32x32xbf16, #tpu.memory_space<vmem>>, vector<1x32x32xbf16>
    %297 = vector.shape_cast %296 : vector<1x32x32xbf16> to vector<32x32xbf16>
    %cst_109 = arith.constant dense<0.000000e+00> : vector<16x32xf32>
    %298 = tpu.matmul %295, %297, %cst_109 {dimension_numbers = #tpu.dot_dimension_numbers<[1], [0], [0], [1], [0, 0, 1, 1], [], []>} : vector<16x32xbf16>, vector<32x32xbf16>, vector<16x32xf32> -> vector<16x32xf32>
    %c1_110 = arith.constant 1 : index
    %c0_111 = arith.constant 0 : index
    %c0_112 = arith.constant 0 : index
    %299 = vector.load %arg9[%c1_110, %c0_111, %c0_112] : memref<2x1x32xf32, #tpu.memory_space<vmem>>, vector<1x1x32xf32>
    %300 = vector.shape_cast %299 : vector<1x1x32xf32> to vector<1x32xf32>
    %301 = vector.broadcast %300 : vector<1x32xf32> to vector<16x32xf32>
    %302 = arith.addf %298, %301 : vector<16x32xf32>
    %303 = arith.addf %302, %209 : vector<16x32xf32>
    %c1_113 = arith.constant 1 : index
    %c0_114 = arith.constant 0 : index
    %c0_115 = arith.constant 0 : index
    %304 = vector.load %arg10[%c1_113, %c0_114, %c0_115] : memref<2x1x32xf32, #tpu.memory_space<vmem>>, vector<1x1x32xf32>
    %305 = vector.shape_cast %304 : vector<1x1x32xf32> to vector<1x32xf32>
    %c1_116 = arith.constant 1 : index
    %c0_117 = arith.constant 0 : index
    %c0_118 = arith.constant 0 : index
    %306 = vector.load %arg11[%c1_116, %c0_117, %c0_118] : memref<2x1x32xf32, #tpu.memory_space<vmem>>, vector<1x1x32xf32>
    %307 = vector.shape_cast %306 : vector<1x1x32xf32> to vector<1x32xf32>
    %cst_119 = arith.constant dense<0.000000e+00> : vector<16xf32>
    %308 = vector.multi_reduction <add>, %303, %cst_119 [1] : vector<16x32xf32> to vector<16xf32>
    %309 = vector.shape_cast %308 : vector<16xf32> to vector<16x1xf32>
    %cst_120 = arith.constant 3.200000e+01 : f32
    %310 = vector.broadcast %cst_120 : f32 to vector<16x1xf32>
    %311 = arith.divf %309, %310 : vector<16x1xf32>
    %312 = vector.broadcast %311 : vector<16x1xf32> to vector<16x32xf32>
    %313 = arith.subf %303, %312 : vector<16x32xf32>
    %314 = arith.mulf %313, %313 : vector<16x32xf32>
    %cst_121 = arith.constant dense<0.000000e+00> : vector<16xf32>
    %315 = vector.multi_reduction <add>, %314, %cst_121 [1] : vector<16x32xf32> to vector<16xf32>
    %316 = vector.shape_cast %315 : vector<16xf32> to vector<16x1xf32>
    %cst_122 = arith.constant 3.200000e+01 : f32
    %317 = vector.broadcast %cst_122 : f32 to vector<16x1xf32>
    %318 = arith.divf %316, %317 : vector<16x1xf32>
    %319 = vector.broadcast %311 : vector<16x1xf32> to vector<16x32xf32>
    %320 = arith.subf %303, %319 : vector<16x32xf32>
    %cst_123 = arith.constant 9.99999996E-13 : f32
    %321 = vector.broadcast %cst_123 : f32 to vector<16x1xf32>
    %322 = arith.addf %318, %321 : vector<16x1xf32>
    %323 = math.rsqrt %322 : vector<16x1xf32>
    %324 = vector.broadcast %323 : vector<16x1xf32> to vector<16x32xf32>
    %325 = arith.mulf %320, %324 : vector<16x32xf32>
    %326 = vector.broadcast %305 : vector<1x32xf32> to vector<16x32xf32>
    %327 = arith.mulf %325, %326 : vector<16x32xf32>
    %328 = vector.broadcast %307 : vector<1x32xf32> to vector<16x32xf32>
    %329 = arith.addf %327, %328 : vector<16x32xf32>
    %330 = arith.truncf %329 : vector<16x32xf32> to vector<16x32xbf16>
    %c1_124 = arith.constant 1 : index
    %c0_125 = arith.constant 0 : index
    %c0_126 = arith.constant 0 : index
    %331 = vector.load %arg12[%c1_124, %c0_125, %c0_126] : memref<2x32x64xbf16, #tpu.memory_space<vmem>>, vector<1x32x64xbf16>
    %332 = vector.shape_cast %331 : vector<1x32x64xbf16> to vector<32x64xbf16>
    %cst_127 = arith.constant dense<0.000000e+00> : vector<16x64xf32>
    %333 = tpu.matmul %330, %332, %cst_127 {dimension_numbers = #tpu.dot_dimension_numbers<[1], [0], [0], [1], [0, 0, 1, 1], [], []>} : vector<16x32xbf16>, vector<32x64xbf16>, vector<16x64xf32> -> vector<16x64xf32>
    %c1_128 = arith.constant 1 : index
    %c0_129 = arith.constant 0 : index
    %c0_130 = arith.constant 0 : index
    %334 = vector.load %arg13[%c1_128, %c0_129, %c0_130] : memref<2x1x64xf32, #tpu.memory_space<vmem>>, vector<1x1x64xf32>
    %335 = vector.shape_cast %334 : vector<1x1x64xf32> to vector<1x64xf32>
    %336 = vector.broadcast %335 : vector<1x64xf32> to vector<16x64xf32>
    %337 = arith.addf %333, %336 : vector<16x64xf32>
    %338 = arith.mulf %337, %337 : vector<16x64xf32>
    %339 = arith.mulf %337, %338 : vector<16x64xf32>
    %cst_131 = arith.constant 4.471500e-02 : f32
    %340 = vector.broadcast %cst_131 : f32 to vector<16x64xf32>
    %341 = arith.mulf %340, %339 : vector<16x64xf32>
    %342 = arith.addf %337, %341 : vector<16x64xf32>
    %cst_132 = arith.constant 0.797884583 : f32
    %343 = vector.broadcast %cst_132 : f32 to vector<16x64xf32>
    %344 = arith.mulf %343, %342 : vector<16x64xf32>
    %345 = math.tanh %344 : vector<16x64xf32>
    %cst_133 = arith.constant 1.000000e+00 : f32
    %346 = vector.broadcast %cst_133 : f32 to vector<16x64xf32>
    %347 = arith.addf %346, %345 : vector<16x64xf32>
    %cst_134 = arith.constant 5.000000e-01 : f32
    %348 = vector.broadcast %cst_134 : f32 to vector<16x64xf32>
    %349 = arith.mulf %348, %347 : vector<16x64xf32>
    %350 = arith.mulf %337, %349 : vector<16x64xf32>
    %351 = arith.truncf %350 : vector<16x64xf32> to vector<16x64xbf16>
    %c1_135 = arith.constant 1 : index
    %c0_136 = arith.constant 0 : index
    %c0_137 = arith.constant 0 : index
    %352 = vector.load %arg14[%c1_135, %c0_136, %c0_137] : memref<2x64x32xbf16, #tpu.memory_space<vmem>>, vector<1x64x32xbf16>
    %353 = vector.shape_cast %352 : vector<1x64x32xbf16> to vector<64x32xbf16>
    %cst_138 = arith.constant dense<0.000000e+00> : vector<16x32xf32>
    %354 = tpu.matmul %351, %353, %cst_138 {dimension_numbers = #tpu.dot_dimension_numbers<[1], [0], [0], [1], [0, 0, 1, 1], [], []>} : vector<16x64xbf16>, vector<64x32xbf16>, vector<16x32xf32> -> vector<16x32xf32>
    %c1_139 = arith.constant 1 : index
    %c0_140 = arith.constant 0 : index
    %c0_141 = arith.constant 0 : index
    %355 = vector.load %arg15[%c1_139, %c0_140, %c0_141] : memref<2x1x32xf32, #tpu.memory_space<vmem>>, vector<1x1x32xf32>
    %356 = vector.shape_cast %355 : vector<1x1x32xf32> to vector<1x32xf32>
    %357 = vector.broadcast %356 : vector<1x32xf32> to vector<16x32xf32>
    %358 = arith.addf %354, %357 : vector<16x32xf32>
    %359 = arith.addf %358, %329 : vector<16x32xf32>
    %c1_142 = arith.constant 1 : index
    %c0_143 = arith.constant 0 : index
    %c0_144 = arith.constant 0 : index
    %360 = vector.load %arg16[%c1_142, %c0_143, %c0_144] : memref<2x1x32xf32, #tpu.memory_space<vmem>>, vector<1x1x32xf32>
    %361 = vector.shape_cast %360 : vector<1x1x32xf32> to vector<1x32xf32>
    %c1_145 = arith.constant 1 : index
    %c0_146 = arith.constant 0 : index
    %c0_147 = arith.constant 0 : index
    %362 = vector.load %arg17[%c1_145, %c0_146, %c0_147] : memref<2x1x32xf32, #tpu.memory_space<vmem>>, vector<1x1x32xf32>
    %363 = vector.shape_cast %362 : vector<1x1x32xf32> to vector<1x32xf32>
    %cst_148 = arith.constant dense<0.000000e+00> : vector<16xf32>
    %364 = vector.multi_reduction <add>, %359, %cst_148 [1] : vector<16x32xf32> to vector<16xf32>
    %365 = vector.shape_cast %364 : vector<16xf32> to vector<16x1xf32>
    %cst_149 = arith.constant 3.200000e+01 : f32
    %366 = vector.broadcast %cst_149 : f32 to vector<16x1xf32>
    %367 = arith.divf %365, %366 : vector<16x1xf32>
    %368 = vector.broadcast %367 : vector<16x1xf32> to vector<16x32xf32>
    %369 = arith.subf %359, %368 : vector<16x32xf32>
    %370 = arith.mulf %369, %369 : vector<16x32xf32>
    %cst_150 = arith.constant dense<0.000000e+00> : vector<16xf32>
    %371 = vector.multi_reduction <add>, %370, %cst_150 [1] : vector<16x32xf32> to vector<16xf32>
    %372 = vector.shape_cast %371 : vector<16xf32> to vector<16x1xf32>
    %cst_151 = arith.constant 3.200000e+01 : f32
    %373 = vector.broadcast %cst_151 : f32 to vector<16x1xf32>
    %374 = arith.divf %372, %373 : vector<16x1xf32>
    %375 = vector.broadcast %367 : vector<16x1xf32> to vector<16x32xf32>
    %376 = arith.subf %359, %375 : vector<16x32xf32>
    %cst_152 = arith.constant 9.99999996E-13 : f32
    %377 = vector.broadcast %cst_152 : f32 to vector<16x1xf32>
    %378 = arith.addf %374, %377 : vector<16x1xf32>
    %379 = math.rsqrt %378 : vector<16x1xf32>
    %380 = vector.broadcast %379 : vector<16x1xf32> to vector<16x32xf32>
    %381 = arith.mulf %376, %380 : vector<16x32xf32>
    %382 = vector.broadcast %361 : vector<1x32xf32> to vector<16x32xf32>
    %383 = arith.mulf %381, %382 : vector<16x32xf32>
    %384 = vector.broadcast %363 : vector<1x32xf32> to vector<16x32xf32>
    %385 = arith.addf %383, %384 : vector<16x32xf32>
    %c0_153 = arith.constant 0 : index
    %c0_154 = arith.constant 0 : index
    %386 = vector.load %arg18[%c0_153, %c0_154] : memref<16x32xf32, #tpu.memory_space<vmem>>, vector<16x32xf32>
    tpu.vector_store %arg18[%c0_153, %c0_154], %385 {strides = array<i32>} : memref<16x32xf32, #tpu.memory_space<vmem>>, vector<16x32xf32>,
    %c0_155 = arith.constant 0 : index
    %c0_156 = arith.constant 0 : index
    %387 = vector.load %arg3[%c0_155, %c0_156] : memref<16x1xf32, #tpu.memory_space<vmem>>, vector<16x1xf32>
    %388 = vector.broadcast %387 : vector<16x1xf32> to vector<16x32xf32>
    %389 = arith.mulf %385, %388 : vector<16x32xf32>
    %390 = vector.shape_cast %389 : vector<16x32xf32> to vector<2x8x32xf32>
    %cst_157 = arith.constant dense<0.000000e+00> : vector<2x32xf32>
    %391 = vector.multi_reduction <add>, %390, %cst_157 [1] : vector<2x8x32xf32> to vector<2x32xf32>
    %392 = vector.shape_cast %387 : vector<16x1xf32> to vector<2x8x1xf32>
    %cst_158 = arith.constant dense<0.000000e+00> : vector<2x1xf32>
    %393 = vector.multi_reduction <add>, %392, %cst_158 [1] : vector<2x8x1xf32> to vector<2x1xf32>
    %cst_159 = arith.constant 9.99999971E-10 : f32
    %394 = vector.broadcast %cst_159 : f32 to vector<2x1xf32>
    %395 = arith.maximumf %393, %394 : vector<2x1xf32>
    %396 = vector.broadcast %395 : vector<2x1xf32> to vector<2x32xf32>
    %397 = arith.divf %391, %396 : vector<2x32xf32>
    %c0_160 = arith.constant 0 : index
    %c0_161 = arith.constant 0 : index
    %398 = vector.load %arg19[%c0_160, %c0_161] : memref<2x32xf32, #tpu.memory_space<vmem>>, vector<2x32xf32>
    tpu.vector_store %arg19[%c0_160, %c0_161], %397 {strides = array<i32>} : memref<2x32xf32, #tpu.memory_space<vmem>>, vector<2x32xf32>,
    return
  }
}

</mosaic_0001>

<bundles_post_ra>
// kernel: sts_bert_forward.1
= control target key start
LH: loop header
LB: loop body
LE: loop exit
PB: predicated region body
PF: predicated region fallthrough
CT: control target
= control target key end

     0   :  { %s4268_s0 = inlined_call_operand.vmem [shape: f32[16,32], index: 0, kind: input, shape index: {}]   ;;  %s4269_s1 = inlined_call_operand.vmem [shape: f32[8,32], index: 1, kind: input, shape index: {}]   ;;  %s4270_s2 = inlined_call_operand.vmem [shape: f32[2,1,8], index: 2, kind: input, shape index: {}]   ;;  %s4271_s3 = inlined_call_operand.vmem [shape: f32[16,1], index: 3, kind: input, shape index: {}]   ;;  %s4272_s4 = inlined_call_operand.vmem [shape: f32[1,32], index: 4, kind: input, shape index: {}]   ;;  %s4273_s5 = inlined_call_operand.vmem [shape: f32[1,32], index: 5, kind: input, shape index: {}]   ;;  %s4274_s6 = inlined_call_operand.vmem [shape: bf16[2,32,96], index: 6, kind: input, shape index: {}]   ;;  %s4275_s7 = inlined_call_operand.vmem [shape: f32[2,1,96], index: 7, kind: input, shape index: {}]   ;;  %s4276_s8 = inlined_call_operand.vmem [shape: bf16[2,32,32], index: 8, kind: input, shape index: {}]   ;;  %s4277_s9 = inlined_call_operand.vmem [shape: f32[2,1,32], index: 9, kind: input, shape index: {}]   ;;  %s4278_s10 = inlined_call_operand.vmem [shape: f32[2,1,32], index: 10, kind: input, shape index: {}]   ;;  %s4279_s11 = inlined_call_operand.vmem [shape: f32[2,1,32], index: 11, kind: input, shape index: {}]   ;;  %s4280_s12 = inlined_call_operand.vmem [shape: bf16[2,32,64], index: 12, kind: input, shape index: {}]   ;;  %s4281_s13 = inlined_call_operand.vmem [shape: f32[2,1,64], index: 13, kind: input, shape index: {}]   ;;  %s4282_s14 = inlined_call_operand.vmem [shape: bf16[2,64,32], index: 14, kind: input, shape index: {}]   ;;  %s4283_s15 = inlined_call_operand.vmem [shape: f32[2,1,32], index: 15, kind: input, shape index: {}]   ;;  %s4284_s16 = inlined_call_operand.vmem [shape: f32[2,1,32], index: 16, kind: input, shape index: {}]   ;;  %s4285_s17 = inlined_call_operand.vmem [shape: f32[2,1,32], index: 17, kind: input, shape index: {}]   ;;  %s4286_s18 = inlined_call_operand.hbm [shape: f32[16,32], index: 18, kind: output, shape index: {0}]   ;;  %s4287_s19 = inlined_call_operand.hbm [shape: f32[2,32], index: 19, kind: output, shape index: {1}]  }
   0x1   :  { %4299 = sst [smem:[#allocation8_spill]] %s4268_s0 }
   0x2   :  { %4300 = sst [smem:[#allocation9_spill]] %s4269_s1 }
   0x3   :  { %4301 = sst [smem:[#allocation10_spill]] %s4270_s2 }
   0x4   :  { %4302 = sst [smem:[#allocation11_spill]] %s4271_s3 }
   0x5   :  { %25 = vsyncpa [#allocation3], 0  ;;  %s4303_s20 = sld [smem:[#allocation8_spill]]  ;;  %vm71_vm0 = vcmask 261120  }
   0x6   :  { %s4304_s22 = sld [smem:[#allocation9_spill]] }
   0xb   :  { %v64_v0 = vld [vmem:[%s4303_s20] sm:$0xff]  ;;  %v65_v2 = vld [vmem:[%s4303_s20 + $0x8] sm:$0xff] }
   0xc   :  { %v66_v1 = vld [vmem:[%s4304_s22] sm:$0xff] }
   0xd   :  { %v67_v3 = vadd.f32 %v66_v1, %v64_v0  ;;  %v68_v4 = vadd.f32 %v66_v1, %v65_v2 }
   0xf   :  { %v72_v5 = vsel %vm71_vm0, %v67_v3, 0.0  ;;  %v75_v6 = vsel %vm71_vm0, %v68_v4, 0.0 }
  0x10   :  { %73 = vadd.xlane.f32.xlu0 %v72_v5 }
  0x14   :  { %76 = vadd.xlane.f32.xlu0 %v75_v6 }
  0x15   :  { %26 = vsyncpa [#allocation5], 0  ;;  %v3388_v17 = vld [vmem:[%s4274_s6 + $0x8] sm:$0xff]   ;;  %v3550_v18 = vmov 0.0   ;;  %vm3551_vm1 = vmmov 0   ;;  %v3389_v19 = vld [vmem:[%s4274_s6] sm:$0xff]  }
  0x16   :  { %3072 = vmatprep.subr.bf16.mxu1 %v3550_v18  ;;  %3076 = vmatprep.mubr.msk.bf16.mxu1 %vm3551_vm1, %v3550_v18  ;;  %v2864_v28 = vld [vmem:[%s4272_s4] ss:$0 sm:$0xff]  ;;  %vm205_vm2 = vcmask 64512   ;;  %s4305_s1 = sld [smem:[#allocation10_spill]]  ;;  %s3553_s23 = smov 64   ;;  %vm329_vm3 = vcmask 1043456  }
  0x17   :  { %3073 = vmatpush3.bf16.msra.mxu1 %v3388_v17  ;;  %3086 = vmatprep.subr.bf16.mxu0 %v3550_v18  ;;  %v2865_v32 = vld [vmem:[%s4273_s5] ss:$0 sm:$0xff]  ;;  %s3552_s5 = smov 96   ;;  %s3554_s24 = smov 88   ;;  %vm1107_vm4 = vcmask 130048   ;;  %vm1110_vm5 = vcmask 195584  }
  0x18   :  { %3074 = vmatprep.subr.bf16.mxu1 %v3550_v18  ;;  %3088 = vmatprep.mubr.msk.bf16.mxu0 %vm3551_vm1, %v3550_v18  ;;  %v2868_v37 = vld [vmem:[%s4275_s7] ss:$0 sm:$0xff]  ;;  %s3555_s25 = smov 120   ;;  %s3556_s3 = smov 56   ;;  %vm1353_vm6 = vcmask 523264   ;;  %vm2796_vm7 = vcmask 7168  }
  0x19   :  { %s3557_s26 = smov 80   ;;  %s3558_s27 = smov 112  }
  0x1a   :  { %s3559_s28 = smov 48   ;;  %s3560_s29 = smov 72  }
  0x1b   :  { %3075 = vmatpush3.bf16.msra.mxu1 %v3389_v19  ;;  %s4297_s0 = smov 104   ;;  %s4295_s4 = smov 40  }
  0x1c   :  { %3080 = vmatprep.subr.bf16.mxu1 %v3550_v18  ;;  %v3738_v50 = vld [vmem:[%s4305_s1] ss:$0 sm:$0xff]  ;;  %v3744_v54 = vld [vmem:[%s4305_s1 + $0x1] ss:$0 sm:$0xff]  ;;  %s4292_s30 = smov 8   ;;  %s4291_s20 = smov 16  }
  0x1d   :  { %s3567_s2 = smov [#allocation2]  }
  0x99   :  { %v74_v7 = vpop.xlane.xlu0 %73 }
  0x9a   :  { %v79_v8 = vmul.f32 0.03125, %v74_v7 }
  0x9c   :  { %v81_v9 = vsub.f32 %v67_v3, %v79_v8 }
  0x9d   :  { %v77_v10 = vpop.xlane.xlu0 %76 }
  0x9e   :  { %v80_v11 = vmul.f32 0.03125, %v77_v10  ;;  %v83_v12 = vmul.f32 %v81_v9, %v81_v9 }
  0xa0   :  { %v82_v13 = vsub.f32 %v68_v4, %v80_v11  ;;  %v85_v14 = vsel %vm71_vm0, %v83_v12, 0.0 }
  0xa1   :  { %86 = vadd.xlane.f32.xlu1 %v85_v14 }
  0xa2   :  { %v84_v15 = vmul.f32 %v82_v13, %v82_v13 }
  0xa4   :  { %v88_v16 = vsel %vm71_vm0, %v84_v15, 0.0 }
  0xa5   :  { %89 = vadd.xlane.f32.xlu1 %v88_v16 }
 0x12a   :  { %v87_v20 = vpop.xlane.xlu1 %86 }
 0x12b   :  { %v91_v21 = vmul.f32 0.03125, %v87_v20 }
 0x12d   :  { %v93_v22 = vadd.f32 1e-12, %v91_v21 }
 0x12e   :  { %v90_v23 = vpop.xlane.xlu1 %89 }
 0x12f   :  { %3408 = vrsqrt.f32 %v93_v22  ;;  %v92_v24 = vmul.f32 0.03125, %v90_v23 }
 0x131   :  { %v94_v25 = vadd.f32 1e-12, %v92_v24 }
 0x133   :  { %3410 = vrsqrt.f32 %v94_v25 }
 0x13c   :  { %v3409_v26 = vpop.eup %3408 }
 0x13d   :  { %v97_v27 = vmul.f32 %v3409_v26, %v81_v9 }
 0x13f   :  { %v105_v31 = vmul.f32 %v2864_v28, %v97_v27 }
 0x140   :  { %v3411_v29 = vpop.eup %3410 }
 0x141   :  { %v98_v30 = vmul.f32 %v3411_v29, %v82_v13  ;;  %v3703_v34 = vadd.f32 %v2865_v32, %v105_v31 }
 0x143   :  { %v106_v33 = vmul.f32 %v2864_v28, %v98_v30 }
 0x145   :  { %v3705_v35 = vadd.f32 %v2865_v32, %v106_v33 }
 0x147   :  { %v129_v36 = vpack.c.bf16 %v3705_v35, %v3703_v34 }
 0x149   :  { %3077 = vmatmul.mubr.msk.bf16.vlgmr.msra.gmra.mxu1 %vm71_vm0, %v129_v36 }
 0x14a   :  { %3082 = vmatprep.mubr.msk.bf16.mxu1 %vm3551_vm1, %v3550_v18 }
 0x209   :  { %v190_v38 = vpop.f32.mrf.mxu1 }
 0x20a   :  { %v191_v39 = vadd.f32 %v2868_v37, %v190_v38 }
 0x20b   :  { %v3078_v40 = vpop.f32.mrf.mxu1 }
 0x20c   :  { %v3715_v41 = vpack.c.bf16 %v191_v39, %v191_v39 }
 0x20d   :  { %v193_v42 = vpop.f32.mrf.mxu1 }
 0x20e   :  { %v194_v43 = vadd.f32 %v2868_v37, %v193_v42  ;;  %203 = vrot.lane.b32.xlu0 %v3715_v41, %s3552_s5 }
 0x20f   :  { %v3079_v44 = vpop.f32.mrf.mxu1 }
 0x210   :  { %v3719_v45 = vpack.c.bf16 %v194_v43, %v194_v43 }
 0x212   :  { %252 = vrot.lane.b32.xlu1 %v3719_v45, %s3552_s5 }
 0x280   :  { %v204_v46 = vpop.permute.xlu0 %203 }
 0x281   :  { %v210_v47 = vsel %vm205_vm2, %v204_v46, 0 }
 0x282   :  { %3081 = vmatpush3.bf16.xpose.msra.mxu1 %v210_v47 }
 0x283   :  { %3092 = vmatprep.subr.bf16.mxu1 %v3550_v18 }
 0x284   :  { %v253_v48 = vpop.permute.xlu1 %252 }
 0x285   :  { %v258_v49 = vsel %vm205_vm2, %v253_v48, 0 }
 0x286   :  { %3087 = vmatpush3.bf16.xpose.msra.mxu0 %v258_v49 }
 0x287   :  { %3098 = vmatprep.subr.bf16.mxu0 %v3550_v18 }
 0x289   :  { %3083 = vmatmul.mubr.msk.bf16.vlgmr.msra.gmra.mxu1 %vm205_vm2, %v3715_v41 }
 0x28a   :  { %3094 = vmatprep.mubr.msk.bf16.mxu1 %vm3551_vm1, %v3550_v18 }
 0x28d   :  { %3089 = vmatmul.mubr.msk.bf16.vlgmr.msra.gmra.mxu0 %vm205_vm2, %v3719_v45 }
 0x28e   :  { %3100 = vmatprep.mubr.msk.bf16.mxu0 %vm3551_vm1, %v3550_v18 }
 0x349   :  { %v246_v51 = vpop.f32.mrf.mxu1 }
 0x34a   :  { %v247_v52 = vadd.f32 %v3738_v50, %v246_v51 }
 0x34b   :  { %v3084_v53 = vpop.f32.mrf.mxu1 }
 0x34c   :  { %v300_v55 = vsel %vm205_vm2, %v247_v52, -inf }
 0x34d   :  { %v294_v56 = vpop.f32.mrf.mxu0  ;;  %301 = vmax.xlane.f32.xlu1 %v300_v55  ;;  %v249_v57 = vpop.f32.mrf.mxu1 }
 0x34e   :  { %v295_v58 = vadd.f32 %v3744_v54, %v294_v56 }
 0x34f   :  { %v3085_v59 = vpop.f32.mrf.mxu1  ;;  %v3090_v60 = vpop.f32.mrf.mxu0 }
 0x350   :  { %v303_v61 = vsel %vm205_vm2, %v295_v58, -inf }
 0x351   :  { %304 = vmax.xlane.f32.xlu0 %v303_v61  ;;  %v297_v62 = vpop.f32.mrf.mxu0 }
 0x353   :  { %v3091_v63 = vpop.f32.mrf.mxu0 }
 0x35e   :  { %373 = vrot.lane.b32.xlu1 %v3719_v45, %s3553_s23 }
 0x362   :  { %423 = vrot.lane.b32.xlu1 %v3715_v41, %s3554_s24 }
 0x3d6   :  { %v302_v0 = vpop.xlane.xlu1 %301 }
 0x3d7   :  { %v306_v1 = vsub.f32 %v247_v52, %v302_v0 }
 0x3d9   :  { %v308_v2 = vmul.f32 1.442695, %v306_v1 }
 0x3da   :  { %v305_v3 = vpop.xlane.xlu0 %304  ;;  %v374_v4 = vpop.permute.xlu1 %373 }
 0x3db   :  { %3412 = vpow2.f32 %v308_v2  ;;  %v307_v5 = vsub.f32 %v295_v58, %v305_v3  ;;  %v379_v6 = vsel %vm329_vm3, %v374_v4, 0 }
 0x3dc   :  { %3099 = vmatpush3.bf16.msra.mxu0 %v379_v6 }
 0x3dd   :  { %v310_v7 = vmul.f32 1.442695, %v307_v5  ;;  %3110 = vmatprep.subr.bf16.mxu0 %v3550_v18 }
 0x3de   :  { %v424_v12 = vpop.permute.xlu1 %423 }
 0x3df   :  { %3414 = vpow2.f32 %v310_v7  ;;  %v429_v22 = vsel %vm205_vm2, %v424_v12, 0 }
 0x3e8   :  { %v3413_v8 = vpop.eup %3412 }
 0x3e9   :  { %v312_v9 = vsel %vm205_vm2, %v3413_v8, 0.0 }
 0x3ea   :  { %313 = vadd.xlane.f32.xlu0 %v312_v9 }
 0x3ec   :  { %v3415_v10 = vpop.eup %3414 }
 0x3ed   :  { %v315_v11 = vsel %vm205_vm2, %v3415_v10, 0.0 }
 0x3ee   :  { %316 = vadd.xlane.f32.xlu1 %v315_v11 }
 0x3ff   :  { %473 = vrot.lane.b32.xlu1 %v3719_v45, %s3554_s24 }
 0x400   :  { %324 = vrot.lane.b32.xlu0 %v3715_v41, %s3553_s23 }
 0x403   :  { %471 = vrot.lane.b32.xlu1 %v3719_v45, %s3555_s25 }
 0x404   :  { %421 = vrot.lane.b32.xlu0 %v3715_v41, %s3555_s25 }
 0x473   :  { %v314_v13 = vpop.xlane.xlu0 %313 }
 0x474   :  { %3416 = vrcp.f32 %v314_v13 }
 0x477   :  { %v325_v14 = vpop.permute.xlu0 %324  ;;  %v317_v15 = vpop.xlane.xlu1 %316 }
 0x478   :  { %v331_v16 = vsel %vm329_vm3, %v325_v14, 0  ;;  %3418 = vrcp.f32 %v317_v15 }
 0x479   :  { %3093 = vmatpush3.bf16.msra.mxu1 %v331_v16 }
 0x47a   :  { %3104 = vmatprep.subr.bf16.mxu1 %v3550_v18 }
 0x47b   :  { %v474_v24 = vpop.permute.xlu1 %473  ;;  %v422_v27 = vpop.permute.xlu0 %421 }
 0x47c   :  { %v479_v26 = vsel %vm205_vm2, %v474_v24, 0 }
 0x47f   :  { %v472_v28 = vpop.permute.xlu1 %471 }
 0x481   :  { %v3417_v17 = vpop.eup %3416 }
 0x482   :  { %v320_v19 = vmul.f32 %v3417_v17, %v3413_v8 }
 0x484   :  { %v322_v20 = vpack.c.bf16 %v320_v19, %v320_v19 }
 0x485   :  { %v3419_v21 = vpop.eup %3418 }
 0x486   :  { %3095 = vmatmul.mubr.msk.bf16.vlgmr.msra.gmra.mxu1 %vm205_vm2, %v322_v20  ;;  %v321_v23 = vmul.f32 %v3419_v21, %v3415_v10 }
 0x487   :  { %3105 = vmatpush3.bf16.xpose.msra.mxu1 %v429_v22  ;;  %3106 = vmatprep.mubr.msk.bf16.mxu1 %vm3551_vm1, %v3550_v18 }
 0x488   :  { %v323_v25 = vpack.c.bf16 %v321_v23, %v321_v23  ;;  %3116 = vmatprep.subr.bf16.mxu1 %v3550_v18 }
 0x48a   :  { %3101 = vmatmul.mubr.msk.bf16.vlgmr.msra.gmra.mxu0 %vm205_vm2, %v323_v25 }
 0x48b   :  { %3111 = vmatpush3.bf16.xpose.msra.mxu0 %v479_v26  ;;  %3112 = vmatprep.mubr.msk.bf16.mxu0 %vm3551_vm1, %v3550_v18 }
 0x48c   :  { %3122 = vmatprep.subr.bf16.mxu0 %v3550_v18 }
 0x48e   :  { %3107 = vmatmul.mubr.msk.bf16.vlgmr.msra.gmra.mxu1 %vm205_vm2, %v422_v27 }
 0x48f   :  { %3118 = vmatprep.mubr.msk.bf16.mxu1 %vm3551_vm1, %v3550_v18 }
 0x492   :  { %3113 = vmatmul.mubr.msk.bf16.vlgmr.msra.gmra.mxu0 %vm205_vm2, %v472_v28 }
 0x493   :  { %3124 = vmatprep.mubr.msk.bf16.mxu0 %vm3551_vm1, %v3550_v18 }
 0x546   :  { %v3783_v29 = vpop.f32.mrf.mxu1 }
 0x548   :  { %v3096_v30 = vpop.f32.mrf.mxu1 }
 0x54a   :  { %v370_v31 = vpop.f32.mrf.mxu1  ;;  %v3785_v32 = vpop.f32.mrf.mxu0 }
 0x54c   :  { %v3097_v33 = vpop.f32.mrf.mxu1  ;;  %v3102_v36 = vpop.f32.mrf.mxu0 }
 0x54e   :  { %v418_v37 = vpop.f32.mrf.mxu0  ;;  %v465_v38 = vpop.f32.mrf.mxu1 }
 0x54f   :  { %v466_v39 = vadd.f32 %v3738_v50, %v465_v38 }
 0x550   :  { %v3103_v40 = vpop.f32.mrf.mxu0  ;;  %v3108_v42 = vpop.f32.mrf.mxu1 }
 0x551   :  { %v521_v43 = vsel %vm205_vm2, %v466_v39, -inf }
 0x552   :  { %v515_v44 = vpop.f32.mrf.mxu0  ;;  %522 = vmax.xlane.f32.xlu0 %v521_v43  ;;  %v468_v46 = vpop.f32.mrf.mxu1 }
 0x553   :  { %v516_v47 = vadd.f32 %v3744_v54, %v515_v44 }
 0x554   :  { %v3109_v48 = vpop.f32.mrf.mxu1  ;;  %v3114_v49 = vpop.f32.mrf.mxu0 }
 0x555   :  { %v524_v51 = vsel %vm205_vm2, %v516_v47, -inf }
 0x556   :  { %525 = vmax.xlane.f32.xlu1 %v524_v51  ;;  %v518_v52 = vpop.f32.mrf.mxu0 }
 0x558   :  { %v3115_v53 = vpop.f32.mrf.mxu0 }
 0x567   :  { %593 = vrot.lane.b32.xlu1 %v3719_v45, %s3556_s3 }
 0x56b   :  { %643 = vrot.lane.b32.xlu1 %v3715_v41, %s3557_s26 }
 0x56f   :  { %693 = vrot.lane.b32.xlu1 %v3719_v45, %s3557_s26 }
 0x573   :  { %691 = vrot.lane.b32.xlu1 %v3719_v45, %s3558_s27 }
 0x5db   :  { %v523_v55 = vpop.xlane.xlu0 %522 }
 0x5dc   :  { %v527_v56 = vsub.f32 %v466_v39, %v523_v55 }
 0x5de   :  { %v529_v57 = vmul.f32 1.442695, %v527_v56 }
 0x5df   :  { %v526_v58 = vpop.xlane.xlu1 %525 }
 0x5e0   :  { %3420 = vpow2.f32 %v529_v57  ;;  %v528_v59 = vsub.f32 %v516_v47, %v526_v58 }
 0x5e2   :  { %v531_v60 = vmul.f32 1.442695, %v528_v59 }
 0x5e3   :  { %v594_v61 = vpop.permute.xlu1 %593 }
 0x5e4   :  { %3422 = vpow2.f32 %v531_v60  ;;  %v599_v62 = vsel %vm329_vm3, %v594_v61, 0 }
 0x5e5   :  { %3123 = vmatpush3.bf16.msra.mxu0 %v599_v62 }
 0x5e6   :  { %3134 = vmatprep.subr.bf16.mxu0 %v3550_v18 }
 0x5e7   :  { %v644_v8 = vpop.permute.xlu1 %643 }
 0x5e8   :  { %v649_v12 = vsel %vm205_vm2, %v644_v8, 0 }
 0x5eb   :  { %v694_v14 = vpop.permute.xlu1 %693 }
 0x5ec   :  { %v699_v16 = vsel %vm205_vm2, %v694_v14, 0 }
 0x5ed   :  { %v3421_v63 = vpop.eup %3420 }
 0x5ee   :  { %v533_v0 = vsel %vm205_vm2, %v3421_v63, 0.0 }
 0x5ef   :  { %534 = vadd.xlane.f32.xlu0 %v533_v0  ;;  %v692_v19 = vpop.permute.xlu1 %691 }
 0x5f1   :  { %v3423_v1 = vpop.eup %3422 }
 0x5f2   :  { %v536_v2 = vsel %vm205_vm2, %v3423_v1, 0.0 }
 0x5f3   :  { %537 = vadd.xlane.f32.xlu0 %v536_v2 }
 0x609   :  { %545 = vrot.lane.b32.xlu0 %v3715_v41, %s3556_s3 }
 0x60d   :  { %641 = vrot.lane.b32.xlu0 %v3715_v41, %s3558_s27 }
 0x678   :  { %v535_v3 = vpop.xlane.xlu0 %534 }
 0x679   :  { %3424 = vrcp.f32 %v535_v3 }
 0x67c   :  { %v538_v4 = vpop.xlane.xlu0 %537 }
 0x67d   :  { %3426 = vrcp.f32 %v538_v4 }
 0x680   :  { %v546_v5 = vpop.permute.xlu0 %545 }
 0x681   :  { %v551_v6 = vsel %vm329_vm3, %v546_v5, 0 }
 0x682   :  { %3117 = vmatpush3.bf16.msra.mxu1 %v551_v6 }
 0x683   :  { %3128 = vmatprep.subr.bf16.mxu1 %v3550_v18 }
 0x684   :  { %v642_v17 = vpop.permute.xlu0 %641 }
 0x686   :  { %v3425_v7 = vpop.eup %3424 }
 0x687   :  { %v541_v9 = vmul.f32 %v3425_v7, %v3421_v63 }
 0x689   :  { %v543_v10 = vpack.c.bf16 %v541_v9, %v541_v9 }
 0x68a   :  { %v3427_v11 = vpop.eup %3426 }
 0x68b   :  { %3119 = vmatmul.mubr.msk.bf16.vlgmr.msra.gmra.mxu1 %vm205_vm2, %v543_v10  ;;  %v542_v13 = vmul.f32 %v3427_v11, %v3423_v1 }
 0x68c   :  { %3129 = vmatpush3.bf16.xpose.msra.mxu1 %v649_v12  ;;  %3130 = vmatprep.mubr.msk.bf16.mxu1 %vm3551_vm1, %v3550_v18 }
 0x68d   :  { %v544_v15 = vpack.c.bf16 %v542_v13, %v542_v13  ;;  %3140 = vmatprep.subr.bf16.mxu1 %v3550_v18 }
 0x68f   :  { %3125 = vmatmul.mubr.msk.bf16.vlgmr.msra.gmra.mxu0 %vm205_vm2, %v544_v15 }
 0x690   :  { %3135 = vmatpush3.bf16.xpose.msra.mxu0 %v699_v16  ;;  %3136 = vmatprep.mubr.msk.bf16.mxu0 %vm3551_vm1, %v3550_v18 }
 0x691   :  { %3146 = vmatprep.subr.bf16.mxu0 %v3550_v18 }
 0x693   :  { %3131 = vmatmul.mubr.msk.bf16.vlgmr.msra.gmra.mxu1 %vm205_vm2, %v642_v17 }
 0x694   :  { %3142 = vmatprep.mubr.msk.bf16.mxu1 %vm3551_vm1, %v3550_v18 }
 0x697   :  { %3137 = vmatmul.mubr.msk.bf16.vlgmr.msra.gmra.mxu0 %vm205_vm2, %v692_v19 }
 0x698   :  { %3148 = vmatprep.mubr.msk.bf16.mxu0 %vm3551_vm1, %v3550_v18 }
 0x74b   :  { %v3825_v20 = vpop.f32.mrf.mxu1 }
 0x74d   :  { %v3120_v21 = vpop.f32.mrf.mxu1 }
 0x74f   :  { %v590_v22 = vpop.f32.mrf.mxu1  ;;  %v3827_v23 = vpop.f32.mrf.mxu0 }
 0x750   :  { %v3356_v24 = vpack.i.bf16 %v3827_v23, %v3825_v20 }
 0x751   :  { %v3121_v25 = vpop.f32.mrf.mxu1  ;;  %v3126_v26 = vpop.f32.mrf.mxu0 }
 0x753   :  { %v638_v27 = vpop.f32.mrf.mxu0  ;;  %v685_v28 = vpop.f32.mrf.mxu1 }
 0x754   :  { %v686_v30 = vadd.f32 %v3738_v50, %v685_v28 }
 0x755   :  { %v3127_v31 = vpop.f32.mrf.mxu0  ;;  %v3132_v33 = vpop.f32.mrf.mxu1 }
 0x756   :  { %v741_v36 = vsel %vm205_vm2, %v686_v30, -inf }
 0x757   :  { %v735_v37 = vpop.f32.mrf.mxu0  ;;  %742 = vmax.xlane.f32.xlu0 %v741_v36  ;;  %v688_v38 = vpop.f32.mrf.mxu1 }
 0x758   :  { %v736_v39 = vadd.f32 %v3744_v54, %v735_v37 }
 0x759   :  { %v3133_v40 = vpop.f32.mrf.mxu1  ;;  %v3138_v42 = vpop.f32.mrf.mxu0 }
 0x75a   :  { %v744_v43 = vsel %vm205_vm2, %v736_v39, -inf }
 0x75b   :  { %745 = vmax.xlane.f32.xlu1 %v744_v43  ;;  %v738_v44 = vpop.f32.mrf.mxu0 }
 0x75d   :  { %v3139_v46 = vpop.f32.mrf.mxu0 }
 0x76c   :  { %813 = vrot.lane.b32.xlu1 %v3719_v45, %s3559_s28 }
 0x770   :  { %863 = vrot.lane.b32.xlu1 %v3715_v41, %s3560_s29 }
 0x774   :  { %913 = vrot.lane.b32.xlu1 %v3719_v45, %s3560_s29 }
 0x778   :  { %911 = vrot.lane.b32.xlu1 %v3719_v45, %s4297_s0 }
 0x7e0   :  { %v743_v47 = vpop.xlane.xlu0 %742 }
 0x7e1   :  { %v747_v48 = vsub.f32 %v686_v30, %v743_v47 }
 0x7e3   :  { %v749_v49 = vmul.f32 1.442695, %v747_v48 }
 0x7e4   :  { %v746_v51 = vpop.xlane.xlu1 %745 }
 0x7e5   :  { %3428 = vpow2.f32 %v749_v49  ;;  %v748_v52 = vsub.f32 %v736_v39, %v746_v51 }
 0x7e7   :  { %v751_v53 = vmul.f32 1.442695, %v748_v52 }
 0x7e8   :  { %v814_v55 = vpop.permute.xlu1 %813 }
 0x7e9   :  { %3430 = vpow2.f32 %v751_v53  ;;  %v819_v56 = vsel %vm329_vm3, %v814_v55, 0 }
 0x7ea   :  { %3147 = vmatpush3.bf16.msra.mxu0 %v819_v56 }
 0x7eb   :  { %3158 = vmatprep.subr.bf16.mxu0 %v3550_v18 }
 0x7ec   :  { %v864_v2 = vpop.permute.xlu1 %863 }
 0x7ed   :  { %v869_v6 = vsel %vm205_vm2, %v864_v2, 0 }
 0x7f0   :  { %v914_v8 = vpop.permute.xlu1 %913 }
 0x7f1   :  { %v919_v10 = vsel %vm205_vm2, %v914_v8, 0 }
 0x7f2   :  { %v3429_v57 = vpop.eup %3428 }
 0x7f3   :  { %v753_v58 = vsel %vm205_vm2, %v3429_v57, 0.0 }
 0x7f4   :  { %754 = vadd.xlane.f32.xlu0 %v753_v58  ;;  %v912_v12 = vpop.permute.xlu1 %911 }
 0x7f6   :  { %v3431_v59 = vpop.eup %3430 }
 0x7f7   :  { %v756_v60 = vsel %vm205_vm2, %v3431_v59, 0.0 }
 0x7f8   :  { %757 = vadd.xlane.f32.xlu0 %v756_v60 }
 0x80e   :  { %765 = vrot.lane.b32.xlu0 %v3715_v41, %s3559_s28 }
 0x812   :  { %861 = vrot.lane.b32.xlu0 %v3715_v41, %s4297_s0 }
 0x87d   :  { %v755_v61 = vpop.xlane.xlu0 %754 }
 0x87e   :  { %3432 = vrcp.f32 %v755_v61  ;;  %v3390_v61 = vld [vmem:[%s4276_s8 + $0x8] sm:$0xff]  }
 0x881   :  { %v758_v62 = vpop.xlane.xlu0 %757 }
 0x882   :  { %3434 = vrcp.f32 %v758_v62  ;;  %v3391_v62 = vld [vmem:[%s4276_s8] sm:$0xff]  }
 0x885   :  { %v766_v63 = vpop.permute.xlu0 %765 }
 0x886   :  { %v771_v0 = vsel %vm329_vm3, %v766_v63, 0 }
 0x887   :  { %3141 = vmatpush3.bf16.msra.mxu1 %v771_v0 }
 0x888   :  { %3152 = vmatprep.subr.bf16.mxu1 %v3550_v18 }
 0x889   :  { %v862_v11 = vpop.permute.xlu0 %861 }
 0x88b   :  { %v3433_v1 = vpop.eup %3432 }
 0x88c   :  { %v761_v3 = vmul.f32 %v3433_v1, %v3429_v57 }
 0x88e   :  { %v763_v4 = vpack.c.bf16 %v761_v3, %v761_v3 }
 0x88f   :  { %v3435_v5 = vpop.eup %3434 }
 0x890   :  { %3143 = vmatmul.mubr.msk.bf16.vlgmr.msra.gmra.mxu1 %vm205_vm2, %v763_v4  ;;  %v762_v7 = vmul.f32 %v3435_v5, %v3431_v59 }
 0x891   :  { %3153 = vmatpush3.bf16.xpose.msra.mxu1 %v869_v6  ;;  %3154 = vmatprep.mubr.msk.bf16.mxu1 %vm3551_vm1, %v3550_v18 }
 0x892   :  { %v764_v9 = vpack.c.bf16 %v762_v7, %v762_v7  ;;  %3164 = vmatprep.subr.bf16.mxu1 %v3550_v18 }
 0x894   :  { %3149 = vmatmul.mubr.msk.bf16.vlgmr.msra.gmra.mxu0 %vm205_vm2, %v764_v9 }
 0x895   :  { %3159 = vmatpush3.bf16.xpose.msra.mxu0 %v919_v10  ;;  %3160 = vmatprep.mubr.msk.bf16.mxu0 %vm3551_vm1, %v3550_v18 }
 0x896   :  { %3170 = vmatprep.subr.bf16.mxu0 %v3550_v18 }
 0x898   :  { %3155 = vmatmul.mubr.msk.bf16.vlgmr.msra.gmra.mxu1 %vm205_vm2, %v862_v11 }
 0x899   :  { %3166 = vmatprep.mubr.msk.bf16.mxu1 %vm3551_vm1, %v3550_v18 }
 0x89c   :  { %3161 = vmatmul.mubr.msk.bf16.vlgmr.msra.gmra.mxu0 %vm205_vm2, %v912_v12 }
 0x89d   :  { %3172 = vmatprep.mubr.msk.bf16.mxu0 %vm3551_vm1, %v3550_v18 }
 0x950   :  { %v807_v13 = vpop.f32.mrf.mxu1 }
 0x952   :  { %v3144_v14 = vpop.f32.mrf.mxu1 }
 0x954   :  { %v810_v15 = vpop.f32.mrf.mxu1  ;;  %v855_v16 = vpop.f32.mrf.mxu0 }
 0x956   :  { %v3145_v17 = vpop.f32.mrf.mxu1  ;;  %v3150_v19 = vpop.f32.mrf.mxu0 }
 0x958   :  { %v858_v21 = vpop.f32.mrf.mxu0  ;;  %v905_v22 = vpop.f32.mrf.mxu1 }
 0x959   :  { %v906_v25 = vadd.f32 %v3738_v50, %v905_v22  ;;  %v3361_v50 = vpack.i.bf16 %v855_v16, %v807_v13 }
 0x95a   :  { %v3151_v26 = vpop.f32.mrf.mxu0  ;;  %v3156_v27 = vpop.f32.mrf.mxu1 }
 0x95b   :  { %v961_v28 = vsel %vm205_vm2, %v906_v25, -inf }
 0x95c   :  { %v955_v30 = vpop.f32.mrf.mxu0  ;;  %962 = vmax.xlane.f32.xlu0 %v961_v28  ;;  %v908_v31 = vpop.f32.mrf.mxu1 }
 0x95d   :  { %v956_v33 = vadd.f32 %v3744_v54, %v955_v30 }
 0x95e   :  { %v3157_v36 = vpop.f32.mrf.mxu1  ;;  %v3162_v37 = vpop.f32.mrf.mxu0 }
 0x95f   :  { %v964_v38 = vsel %vm205_vm2, %v956_v33, -inf }
 0x960   :  { %965 = vmax.xlane.f32.xlu1 %v964_v38  ;;  %v958_v39 = vpop.f32.mrf.mxu0 }
 0x962   :  { %v3163_v40 = vpop.f32.mrf.mxu0 }
 0x971   :  { %1033 = vrot.lane.b32.xlu1 %v3719_v45, %s4295_s4 }
 0x975   :  { %3357 = vrot.lane.b32.xlu1 %v3356_v24, %s4292_s30  ;;  %s4294_s30 = smov 24  }
 0x979   :  { %3362 = vrot.lane.b32.xlu1 %v3361_v50, %s4291_s20  ;;  %s2839_s20 = sshll.u32 %s3567_s2, 4  ;;  %s2840_s20 = int_to_ptr.vmem [resolvable:$true] %s2839_s20 }
 0x97a   :  { %p3511_p1 = scmp.lt.s32.totalorder %s2840_s20, %s2840_s20 }
 0x9e5   :  { %v963_v54 = vpop.xlane.xlu0 %962 }
 0x9e6   :  { %v967_v42 = vsub.f32 %v906_v25, %v963_v54 }
 0x9e8   :  { %v969_v43 = vmul.f32 1.442695, %v967_v42 }
 0x9e9   :  { %v966_v44 = vpop.xlane.xlu1 %965 }
 0x9ea   :  { %3436 = vpow2.f32 %v969_v43  ;;  %v968_v46 = vsub.f32 %v956_v33, %v966_v44 }
 0x9ec   :  { %v971_v47 = vmul.f32 1.442695, %v968_v46 }
 0x9ed   :  { %v1034_v48 = vpop.permute.xlu1 %1033 }
 0x9ee   :  { %3438 = vpow2.f32 %v971_v47  ;;  %v1039_v45 = vsel %vm329_vm3, %v1034_v48, 0 }
 0x9ef   :  { %3171 = vmatpush3.bf16.msra.mxu0 %v1039_v45 }
 0x9f0   :  { %3184 = vmatprep.subr.bf16.mxu0 %v3550_v18 }
 0x9f1   :  { %v3358_v8 = vpop.permute.xlu1 %3357 }
 0x9f2   :  { %v3360_v10 = vunpack.i.h.bf16 %v3358_v8  ;;  %v3359_v11 = vunpack.i.l.bf16 %v3358_v8 }
 0x9f4   :  { %v1106_v15 = vsel %vm205_vm2, %v3785_v32, %v3360_v10  ;;  %v1105_v16 = vsel %vm205_vm2, %v3783_v29, %v3359_v11  ;;  %v2890_v29 = vld [vmem:[%s4277_s9] ss:$0 sm:$0xff] }
 0x9f5   :  { %v3363_v9 = vpop.permute.xlu1 %3362 }
 0x9f6   :  { %v3365_v12 = vunpack.i.h.bf16 %v3363_v9  ;;  %v3364_v13 = vunpack.i.l.bf16 %v3363_v9 }
 0x9f7   :  { %v3437_v20 = vpop.eup %3436 }
 0x9f8   :  { %v973_v23 = vsel %vm205_vm2, %v3437_v20, 0.0  ;;  %v1109_v21 = vsel %vm1107_vm4, %v1106_v15, %v3365_v12  ;;  %v1108_v22 = vsel %vm1107_vm4, %v1105_v16, %v3364_v13 }
 0x9f9   :  { %974 = vadd.xlane.f32.xlu0 %v973_v23 }
 0x9fb   :  { %v3439_v24 = vpop.eup %3438 }
 0x9fc   :  { %v976_v49 = vsel %vm205_vm2, %v3439_v24, 0.0 }
 0x9fd   :  { %977 = vadd.xlane.f32.xlu0 %v976_v49 }
 0xa13   :  { %985 = vrot.lane.b32.xlu0 %v3715_v41, %s4295_s4 }
 0xa82   :  { %v975_v51 = vpop.xlane.xlu0 %974 }
 0xa83   :  { %3440 = vrcp.f32 %v975_v51 }
 0xa86   :  { %v978_v52 = vpop.xlane.xlu0 %977 }
 0xa87   :  { %3442 = vrcp.f32 %v978_v52 }
 0xa8a   :  { %v986_v53 = vpop.permute.xlu0 %985 }
 0xa8b   :  { %v991_v55 = vsel %vm329_vm3, %v986_v53, 0 }
 0xa8c   :  { %3165 = vmatpush3.bf16.msra.mxu1 %v991_v55 }
 0xa8d   :  { %3176 = vmatprep.subr.bf16.mxu1 %v3550_v18 }
 0xa90   :  { %v3441_v56 = vpop.eup %3440 }
 0xa91   :  { %v981_v57 = vmul.f32 %v3441_v56, %v3437_v20  ;;  %v3393_v20 = vld [vmem:[%s4280_s12] sm:$0xff]  }
 0xa93   :  { %v983_v58 = vpack.c.bf16 %v981_v57, %v981_v57  ;;  %v2894_v57 = vld [vmem:[%s4278_s10] ss:$0 sm:$0xff] }
 0xa94   :  { %v3443_v59 = vpop.eup %3442 }
 0xa95   :  { %3167 = vmatmul.mubr.msk.bf16.vlgmr.msra.gmra.mxu1 %vm205_vm2, %v983_v58  ;;  %v982_v60 = vmul.f32 %v3443_v59, %v3439_v24 }
 0xa96   :  { %3180 = vmatprep.mubr.msk.bf16.mxu1 %vm3551_vm1, %v3550_v18  ;;  %3177 = vmatpush3.bf16.msra.mxu1 %v3390_v61 }
 0xa97   :  { %v984_v41 = vpack.c.bf16 %v982_v60, %v982_v60  ;;  %3178 = vmatprep.subr.bf16.mxu1 %v3550_v18 }
 0xa99   :  { %3173 = vmatmul.mubr.msk.bf16.vlgmr.msra.gmra.mxu0 %vm205_vm2, %v984_v41  ;;  %v2895_v41 = vld [vmem:[%s4279_s11] ss:$0 sm:$0xff] }
 0xa9a   :  { %3188 = vmatprep.mubr.msk.bf16.mxu0 %vm3551_vm1, %v3550_v18  ;;  %3179 = vmatpush3.bf16.msra.mxu1 %v3391_v62 }
 0xa9b   :  { %3192 = vmatprep.subr.bf16.mxu1 %v3550_v18 }
 0xb55   :  { %v1027_v63 = vpop.f32.mrf.mxu1 }
 0xb57   :  { %v3168_v0 = vpop.f32.mrf.mxu1 }
 0xb59   :  { %v1030_v1 = vpop.f32.mrf.mxu1  ;;  %v1075_v2 = vpop.f32.mrf.mxu0 }
 0xb5a   :  { %v3366_v3 = vpack.i.bf16 %v1075_v2, %v1027_v63  ;;  %v3394_v1 = vld [vmem:[%s4282_s14 + $0x18] sm:$0xff]   ;;  %v3395_v2 = vld [vmem:[%s4282_s14 + $0x10] sm:$0xff]  }
 0xb5b   :  { %v3169_v4 = vpop.f32.mrf.mxu1  ;;  %v3174_v5 = vpop.f32.mrf.mxu0 }
 0xb5c   :  { %3367 = vrot.lane.b32.xlu0 %v3366_v3, %s4294_s30  ;;  %v3396_v3 = vld [vmem:[%s4282_s14 + $0x8] sm:$0xff]   ;;  %v3397_v4 = vld [vmem:[%s4282_s14] sm:$0xff]  }
 0xb5d   :  { %v1078_v6 = vpop.f32.mrf.mxu0  ;;  %v2896_v5 = vld [vmem:[%s4281_s13] ss:$0 sm:$0xff] }
 0xb5f   :  { %v3175_v7 = vpop.f32.mrf.mxu0 }
 0xbce   :  { %v3368_v14 = vpop.permute.xlu0 %3367 }
 0xbcf   :  { %v3370_v17 = vunpack.i.h.bf16 %v3368_v14  ;;  %v3369_v19 = vunpack.i.l.bf16 %v3368_v14 }
 0xbd1   :  { %v1112_v25 = vsel %vm1110_vm5, %v1109_v21, %v3370_v17  ;;  %v1111_v26 = vsel %vm1110_vm5, %v1108_v22, %v3369_v19 }
 0xbd2   :  { %v1113_v27 = vpack.c.bf16 %v1112_v25, %v1111_v26 }
 0xbd4   :  { %3181 = vmatmul.mubr.msk.bf16.vlgmr.msra.gmra.mxu1 %vm71_vm0, %v1113_v27 }
 0xbd5   :  { %3200 = vmatprep.mubr.msk.bf16.mxu1 %vm3551_vm1, %v3550_v18  ;;  %3193 = vmatpush3.bf16.msra.mxu1 %v3394_v1 }
 0xbd6   :  { %3194 = vmatprep.subr.bf16.mxu1 %v3550_v18 }
 0xbd9   :  { %3195 = vmatpush3.bf16.msra.mxu1 %v3395_v2 }
 0xbda   :  { %3196 = vmatprep.subr.bf16.mxu1 %v3550_v18 }
 0xbdd   :  { %3197 = vmatpush3.bf16.msra.mxu1 %v3396_v3  ;;  %v2907_v3 = vld [vmem:[%s4285_s17] ss:$0 sm:$0xff] }
 0xbde   :  { %3198 = vmatprep.subr.bf16.mxu1 %v3550_v18 }
 0xbe1   :  { %3199 = vmatpush3.bf16.msra.mxu1 %v3397_v4 }
 0xbe2   :  { %3218 = vmatprep.subr.bf16.mxu1 %v3550_v18 }
 0xc94   :  { %v1174_v32 = vpop.f32.mrf.mxu1 }
 0xc95   :  { %v1175_v28 = vadd.f32 %v2890_v29, %v1174_v32 }
 0xc96   :  { %v3182_v30 = vpop.f32.mrf.mxu1 }
 0xc97   :  { %v1181_v31 = vadd.f32 %v1175_v28, %v3703_v34 }
 0xc98   :  { %v1177_v33 = vpop.f32.mrf.mxu1 }
 0xc99   :  { %v1178_v36 = vadd.f32 %v2890_v29, %v1177_v33  ;;  %v1185_v37 = vsel %vm71_vm0, %v1181_v31, 0.0 }
 0xc9a   :  { %1186 = vadd.xlane.f32.xlu1 %v1185_v37  ;;  %v3183_v38 = vpop.f32.mrf.mxu1  ;;  %v2900_v37 = vld [vmem:[%s4283_s15] ss:$0 sm:$0xff] }
 0xc9b   :  { %v1182_v39 = vadd.f32 %v1178_v36, %v3705_v35  ;;  %v3392_v35 = vld [vmem:[%s4280_s12 + $0x8] sm:$0xff]  }
 0xc9c   :  { %3185 = vmatpush3.bf16.msra.mxu0 %v3392_v35 }
 0xc9d   :  { %v1188_v40 = vsel %vm71_vm0, %v1182_v39, 0.0  ;;  %3186 = vmatprep.subr.bf16.mxu0 %v3550_v18 }
 0xc9e   :  { %1189 = vadd.xlane.f32.xlu0 %v1188_v40 }
 0xca0   :  { %3187 = vmatpush3.bf16.msra.mxu0 %v3393_v20 }
 0xca1   :  { %3204 = vmatprep.subr.bf16.mxu0 %v3550_v18 }
 0xd23   :  { %v1187_v50 = vpop.xlane.xlu1 %1186 }
 0xd24   :  { %v1191_v54 = vmul.f32 0.03125, %v1187_v50 }
 0xd26   :  { %v1193_v42 = vsub.f32 %v1181_v31, %v1191_v54 }
 0xd27   :  { %v1190_v43 = vpop.xlane.xlu0 %1189 }
 0xd28   :  { %v1192_v44 = vmul.f32 0.03125, %v1190_v43  ;;  %v1195_v46 = vmul.f32 %v1193_v42, %v1193_v42 }
 0xd2a   :  { %v1194_v47 = vsub.f32 %v1182_v39, %v1192_v44  ;;  %v1197_v34 = vsel %vm71_vm0, %v1195_v46, 0.0 }
 0xd2b   :  { %1198 = vadd.xlane.f32.xlu0 %v1197_v34 }
 0xd2c   :  { %v1196_v48 = vmul.f32 %v1194_v47, %v1194_v47 }
 0xd2e   :  { %v1200_v45 = vsel %vm71_vm0, %v1196_v48, 0.0 }
 0xd2f   :  { %1201 = vadd.xlane.f32.xlu0 %v1200_v45 }
 0xdb4   :  { %v1199_v23 = vpop.xlane.xlu0 %1198 }
 0xdb5   :  { %v1203_v24 = vmul.f32 0.03125, %v1199_v23 }
 0xdb7   :  { %v1205_v49 = vadd.f32 1e-12, %v1203_v24 }
 0xdb8   :  { %v1202_v51 = vpop.xlane.xlu0 %1201 }
 0xdb9   :  { %3444 = vrsqrt.f32 %v1205_v49  ;;  %v1204_v52 = vmul.f32 0.03125, %v1202_v51 }
 0xdbb   :  { %v1206_v53 = vadd.f32 1e-12, %v1204_v52 }
 0xdbd   :  { %3446 = vrsqrt.f32 %v1206_v53  ;;  %v3398_v53 = vld [vmem:[%s4274_s6 + $0x18] sm:$0xff]  }
 0xdc6   :  { %v3445_v55 = vpop.eup %3444 }
 0xdc7   :  { %v1209_v56 = vmul.f32 %v3445_v55, %v1193_v42  ;;  %v3399_v55 = vld [vmem:[%s4274_s6 + $0x10] sm:$0xff]  }
 0xdc9   :  { %v1217_v60 = vmul.f32 %v2894_v57, %v1209_v56 }
 0xdca   :  { %v3447_v58 = vpop.eup %3446 }
 0xdcb   :  { %v1210_v59 = vmul.f32 %v3447_v58, %v1194_v47  ;;  %v1225_v62 = vadd.f32 %v2895_v41, %v1217_v60 }
 0xdcd   :  { %v1218_v61 = vmul.f32 %v2894_v57, %v1210_v59 }
 0xdcf   :  { %v1226_v63 = vadd.f32 %v2895_v41, %v1218_v61 }
 0xdd1   :  { %v1227_v0 = vpack.c.bf16 %v1226_v63, %v1225_v62 }
 0xdd3   :  { %3189 = vmatmul.mubr.msk.bf16.vlgmr.msra.gmra.mxu0 %vm71_vm0, %v1227_v0 }
 0xdd4   :  { %3208 = vmatprep.mubr.msk.bf16.mxu0 %vm3551_vm1, %v3550_v18  ;;  %3205 = vmatpush3.bf16.msra.mxu0 %v3398_v53 }
 0xdd5   :  { %3206 = vmatprep.subr.bf16.mxu0 %v3550_v18 }
 0xdd8   :  { %3207 = vmatpush3.bf16.msra.mxu0 %v3399_v55 }
 0xdd9   :  { %3212 = vmatprep.subr.bf16.mxu0 %v3550_v18 }
 0xe93   :  { %v1288_v6 = vpop.f32.mrf.mxu0 }
 0xe94   :  { %v1289_v7 = vadd.f32 %v2896_v5, %v1288_v6 }
 0xe95   :  { %v3190_v8 = vpop.f32.mrf.mxu0 }
 0xe96   :  { %v1295_v9 = vmul.f32 %v1289_v7, %v1289_v7  ;;  %v2913_v8 = vld [vmem:[%s4275_s7 + $0x1] ss:$0 sm:$0xff] }
 0xe97   :  { %v1291_v10 = vpop.f32.mrf.mxu0 }
 0xe98   :  { %v1297_v11 = vmul.f32 %v1295_v9, %v1289_v7  ;;  %v1292_v12 = vadd.f32 %v2896_v5, %v1291_v10 }
 0xe99   :  { %v3191_v13 = vpop.f32.mrf.mxu0 }
 0xe9a   :  { %v1299_v14 = vmul.f32 0.044715, %v1297_v11  ;;  %v1296_v15 = vmul.f32 %v1292_v12, %v1292_v12 }
 0xe9c   :  { %v1301_v16 = vadd.f32 %v1299_v14, %v1289_v7  ;;  %v1298_v17 = vmul.f32 %v1296_v15, %v1292_v12 }
 0xe9e   :  { %v1303_v19 = vmul.f32 0.7978846, %v1301_v16  ;;  %v1300_v21 = vmul.f32 0.044715, %v1298_v17 }
 0xea0   :  { %3448 = vtanh.f32 %v1303_v19  ;;  %v1302_v22 = vadd.f32 %v1300_v21, %v1292_v12 }
 0xea2   :  { %v1304_v25 = vmul.f32 0.7978846, %v1302_v22 }
 0xea4   :  { %3450 = vtanh.f32 %v1304_v25 }
 0xead   :  { %v3449_v26 = vpop.eup %3448 }
 0xeae   :  { %v1307_v27 = vadd.f32 1.0, %v3449_v26  ;;  %v4018_v26 = vld [vmem:[%s4305_s1] ss:$0 sm:$0xff] }
 0xeb0   :  { %v1309_v32 = vmul.f32 0.5, %v1307_v27 }
 0xeb1   :  { %v3451_v29 = vpop.eup %3450 }
 0xeb2   :  { %v1308_v28 = vadd.f32 1.0, %v3451_v29  ;;  %v1311_v31 = vmul.f32 %v1309_v32, %v1289_v7 }
 0xeb4   :  { %v1310_v30 = vmul.f32 0.5, %v1308_v28 }
 0xeb6   :  { %v1312_v33 = vmul.f32 %v1310_v30, %v1292_v12 }
 0xeb8   :  { %v1313_v36 = vpack.c.bf16 %v1312_v33, %v1311_v31  ;;  %v4025_v31 = vld [vmem:[%s4305_s1 + $0x1] ss:$0 sm:$0xff]  ;;  %s4306_s1 = smov 104  }
 0xeba   :  { %3201 = vmatmul.mubr.msk.bf16.vlgmr.msra.gmra.mxu1 %vm1353_vm6, %v1313_v36 }
 0xebb   :  { %3220 = vmatprep.mubr.msk.bf16.mxu1 %vm3551_vm1, %v3550_v18 }
 0xf7a   :  { %v1391_v38 = vpop.f32.mrf.mxu1 }
 0xf7b   :  { %v1392_v39 = vadd.f32 %v2900_v37, %v1391_v38 }
 0xf7c   :  { %v3202_v40 = vpop.f32.mrf.mxu1 }
 0xf7d   :  { %v1398_v50 = vadd.f32 %v1392_v39, %v1225_v62 }
 0xf7e   :  { %v1394_v54 = vpop.f32.mrf.mxu1 }
 0xf7f   :  { %v1395_v42 = vadd.f32 %v2900_v37, %v1394_v54  ;;  %v1402_v43 = vsel %vm71_vm0, %v1398_v50, 0.0 }
 0xf80   :  { %1403 = vadd.xlane.f32.xlu1 %v1402_v43  ;;  %v3203_v44 = vpop.f32.mrf.mxu1 }
 0xf81   :  { %v1399_v46 = vadd.f32 %v1395_v42, %v1226_v63  ;;  %v2906_v63 = vld [vmem:[%s4284_s16] ss:$0 sm:$0xff] }
 0xf83   :  { %v1405_v47 = vsel %vm71_vm0, %v1399_v46, 0.0 }
 0xf84   :  { %1406 = vadd.xlane.f32.xlu0 %v1405_v47 }
0x1009   :  { %v1404_v34 = vpop.xlane.xlu1 %1403 }
0x100a   :  { %v1408_v48 = vmul.f32 0.03125, %v1404_v34 }
0x100c   :  { %v1410_v45 = vsub.f32 %v1398_v50, %v1408_v48 }
0x100d   :  { %v1407_v35 = vpop.xlane.xlu0 %1406 }
0x100e   :  { %v1409_v20 = vmul.f32 0.03125, %v1407_v35  ;;  %v1412_v23 = vmul.f32 %v1410_v45, %v1410_v45 }
0x1010   :  { %v1411_v24 = vsub.f32 %v1399_v46, %v1409_v20  ;;  %v1414_v49 = vsel %vm71_vm0, %v1412_v23, 0.0 }
0x1011   :  { %1415 = vadd.xlane.f32.xlu1 %v1414_v49 }
0x1012   :  { %v1413_v51 = vmul.f32 %v1411_v24, %v1411_v24 }
0x1014   :  { %v1417_v52 = vsel %vm71_vm0, %v1413_v51, 0.0 }
0x1015   :  { %1418 = vadd.xlane.f32.xlu0 %v1417_v52 }
0x109a   :  { %v1416_v56 = vpop.xlane.xlu1 %1415 }
0x109b   :  { %v1420_v57 = vmul.f32 0.03125, %v1416_v56 }
0x109d   :  { %v1422_v58 = vadd.f32 1e-12, %v1420_v57 }
0x109e   :  { %v1419_v59 = vpop.xlane.xlu0 %1418 }
0x109f   :  { %3452 = vrsqrt.f32 %v1422_v58  ;;  %v1421_v60 = vmul.f32 0.03125, %v1419_v59 }
0x10a1   :  { %v1423_v41 = vadd.f32 1e-12, %v1421_v60 }
0x10a3   :  { %3454 = vrsqrt.f32 %v1423_v41 }
0x10ac   :  { %v3453_v61 = vpop.eup %3452 }
0x10ad   :  { %v1426_v62 = vmul.f32 %v3453_v61, %v1410_v45 }
0x10af   :  { %v1434_v2 = vmul.f32 %v2906_v63, %v1426_v62 }
0x10b0   :  { %v3455_v0 = vpop.eup %3454 }
0x10b1   :  { %v1427_v1 = vmul.f32 %v3455_v0, %v1411_v24  ;;  %v3983_v5 = vadd.f32 %v2907_v3, %v1434_v2 }
0x10b3   :  { %v1435_v4 = vmul.f32 %v2906_v63, %v1427_v1 }
0x10b5   :  { %v3985_v6 = vadd.f32 %v2907_v3, %v1435_v4 }
0x10b7   :  { %v1444_v7 = vpack.c.bf16 %v3985_v6, %v3983_v5 }
0x10b9   :  { %3209 = vmatmul.mubr.msk.bf16.vlgmr.msra.gmra.mxu0 %vm71_vm0, %v1444_v7 }
0x10ba   :  { %3214 = vmatprep.mubr.msk.bf16.mxu0 %vm3551_vm1, %v3550_v18 }
0x1179   :  { %v1507_v9 = vpop.f32.mrf.mxu0 }
0x117a   :  { %v1508_v10 = vadd.f32 %v2913_v8, %v1507_v9 }
0x117b   :  { %v3210_v11 = vpop.f32.mrf.mxu0 }
0x117c   :  { %v3995_v12 = vpack.c.bf16 %v1508_v10, %v1508_v10 }
0x117d   :  { %v1510_v13 = vpop.f32.mrf.mxu0 }
0x117e   :  { %v1511_v14 = vadd.f32 %v2913_v8, %v1510_v13  ;;  %1520 = vrot.lane.b32.xlu1 %v3995_v12, %s3552_s5 }
0x117f   :  { %v3211_v15 = vpop.f32.mrf.mxu0 }
0x1180   :  { %v3999_v16 = vpack.c.bf16 %v1511_v14, %v1511_v14 }
0x1182   :  { %1568 = vrot.lane.b32.xlu0 %v3999_v16, %s3552_s5 }
0x11f0   :  { %v1521_v17 = vpop.permute.xlu1 %1520 }
0x11f1   :  { %v1526_v19 = vsel %vm205_vm2, %v1521_v17, 0 }
0x11f2   :  { %3213 = vmatpush3.bf16.xpose.msra.mxu0 %v1526_v19 }
0x11f3   :  { %3224 = vmatprep.subr.bf16.mxu0 %v3550_v18 }
0x11f4   :  { %v1569_v21 = vpop.permute.xlu0 %1568 }
0x11f5   :  { %v1574_v22 = vsel %vm205_vm2, %v1569_v21, 0 }
0x11f6   :  { %3219 = vmatpush3.bf16.xpose.msra.mxu1 %v1574_v22 }
0x11f7   :  { %3230 = vmatprep.subr.bf16.mxu1 %v3550_v18 }
0x11f9   :  { %3215 = vmatmul.mubr.msk.bf16.vlgmr.msra.gmra.mxu0 %vm205_vm2, %v3995_v12 }
0x11fa   :  { %3226 = vmatprep.mubr.msk.bf16.mxu0 %vm3551_vm1, %v3550_v18 }
0x11fd   :  { %3221 = vmatmul.mubr.msk.bf16.vlgmr.msra.gmra.mxu1 %vm205_vm2, %v3999_v16 }
0x11fe   :  { %3232 = vmatprep.mubr.msk.bf16.mxu1 %vm3551_vm1, %v3550_v18 }
0x12b9   :  { %v1562_v25 = vpop.f32.mrf.mxu0 }
0x12ba   :  { %v1563_v27 = vadd.f32 %v4018_v26, %v1562_v25 }
0x12bb   :  { %v3216_v29 = vpop.f32.mrf.mxu0 }
0x12bc   :  { %v1616_v32 = vsel %vm205_vm2, %v1563_v27, -inf }
0x12bd   :  { %1617 = vmax.xlane.f32.xlu1 %v1616_v32  ;;  %v1565_v28 = vpop.f32.mrf.mxu0  ;;  %v1610_v30 = vpop.f32.mrf.mxu1 }
0x12be   :  { %v1611_v33 = vadd.f32 %v4025_v31, %v1610_v30 }
0x12bf   :  { %v3217_v36 = vpop.f32.mrf.mxu0  ;;  %v3222_v37 = vpop.f32.mrf.mxu1 }
0x12c0   :  { %v1619_v38 = vsel %vm205_vm2, %v1611_v33, -inf }
0x12c1   :  { %1620 = vmax.xlane.f32.xlu0 %v1619_v38  ;;  %v1613_v39 = vpop.f32.mrf.mxu1 }
0x12c3   :  { %v3223_v40 = vpop.f32.mrf.mxu1 }
0x12ce   :  { %1640 = vrot.lane.b32.xlu1 %v3995_v12, %s3553_s23 }
0x1346   :  { %v1618_v50 = vpop.xlane.xlu1 %1617 }
0x1347   :  { %v1622_v54 = vsub.f32 %v1563_v27, %v1618_v50 }
0x1349   :  { %v1624_v42 = vmul.f32 1.442695, %v1622_v54 }
0x134a   :  { %v1641_v43 = vpop.permute.xlu1 %1640  ;;  %v1621_v44 = vpop.xlane.xlu0 %1620 }
0x134b   :  { %3456 = vpow2.f32 %v1624_v42  ;;  %v1646_v46 = vsel %vm329_vm3, %v1641_v43, 0  ;;  %v1623_v47 = vsub.f32 %v1611_v33, %v1621_v44 }
0x134c   :  { %3225 = vmatpush3.bf16.msra.mxu0 %v1646_v46 }
0x134d   :  { %v1626_v34 = vmul.f32 1.442695, %v1623_v47  ;;  %3236 = vmatprep.subr.bf16.mxu0 %v3550_v18 }
0x134f   :  { %3458 = vpow2.f32 %v1626_v34 }
0x1358   :  { %v3457_v48 = vpop.eup %3456 }
0x1359   :  { %v1628_v45 = vsel %vm205_vm2, %v3457_v48, 0.0 }
0x135a   :  { %1629 = vadd.xlane.f32.xlu1 %v1628_v45 }
0x135c   :  { %v3459_v35 = vpop.eup %3458 }
0x135d   :  { %v1631_v20 = vsel %vm205_vm2, %v3459_v35, 0.0 }
0x135e   :  { %1632 = vadd.xlane.f32.xlu0 %v1631_v20 }
0x136b   :  { %1738 = vrot.lane.b32.xlu1 %v3995_v12, %s3554_s24 }
0x136f   :  { %1788 = vrot.lane.b32.xlu1 %v3999_v16, %s3554_s24  ;;  %s4308_s24 = smov 8  }
0x1373   :  { %1736 = vrot.lane.b32.xlu1 %v3995_v12, %s3555_s25 }
0x1374   :  { %1688 = vrot.lane.b32.xlu0 %v3999_v16, %s3553_s23  ;;  %s4307_s23 = smov 40  }
0x1378   :  { %1786 = vrot.lane.b32.xlu0 %v3999_v16, %s3555_s25  ;;  %s4309_s25 = smov 16  }
0x13e3   :  { %v1630_v23 = vpop.xlane.xlu1 %1629 }
0x13e4   :  { %3460 = vrcp.f32 %v1630_v23 }
0x13e7   :  { %v1633_v24 = vpop.xlane.xlu0 %1632  ;;  %v1739_v53 = vpop.permute.xlu1 %1738 }
0x13e8   :  { %3462 = vrcp.f32 %v1633_v24  ;;  %v1744_v58 = vsel %vm205_vm2, %v1739_v53, 0 }
0x13eb   :  { %v1689_v49 = vpop.permute.xlu0 %1688  ;;  %v1789_v60 = vpop.permute.xlu1 %1788 }
0x13ec   :  { %v1694_v51 = vsel %vm329_vm3, %v1689_v49, 0  ;;  %v1794_v61 = vsel %vm205_vm2, %v1789_v60, 0 }
0x13ed   :  { %3231 = vmatpush3.bf16.msra.mxu1 %v1694_v51 }
0x13ee   :  { %3242 = vmatprep.subr.bf16.mxu1 %v3550_v18 }
0x13ef   :  { %v1737_v62 = vpop.permute.xlu1 %1736  ;;  %v1787_v63 = vpop.permute.xlu0 %1786 }
0x13f1   :  { %v3461_v52 = vpop.eup %3460 }
0x13f2   :  { %v1636_v55 = vmul.f32 %v3461_v52, %v3457_v48 }
0x13f4   :  { %v1638_v56 = vpack.c.bf16 %v1636_v55, %v1636_v55 }
0x13f5   :  { %v3463_v57 = vpop.eup %3462 }
0x13f6   :  { %3227 = vmatmul.mubr.msk.bf16.vlgmr.msra.gmra.mxu0 %vm205_vm2, %v1638_v56  ;;  %v1637_v59 = vmul.f32 %v3463_v57, %v3459_v35 }
0x13f7   :  { %3237 = vmatpush3.bf16.xpose.msra.mxu0 %v1744_v58  ;;  %3238 = vmatprep.mubr.msk.bf16.mxu0 %vm3551_vm1, %v3550_v18 }
0x13f8   :  { %v1639_v41 = vpack.c.bf16 %v1637_v59, %v1637_v59  ;;  %3248 = vmatprep.subr.bf16.mxu0 %v3550_v18 }
0x13fa   :  { %3233 = vmatmul.mubr.msk.bf16.vlgmr.msra.gmra.mxu1 %vm205_vm2, %v1639_v41 }
0x13fb   :  { %3243 = vmatpush3.bf16.xpose.msra.mxu1 %v1794_v61  ;;  %3244 = vmatprep.mubr.msk.bf16.mxu1 %vm3551_vm1, %v3550_v18 }
0x13fc   :  { %3254 = vmatprep.subr.bf16.mxu1 %v3550_v18 }
0x13fe   :  { %3239 = vmatmul.mubr.msk.bf16.vlgmr.msra.gmra.mxu0 %vm205_vm2, %v1737_v62 }
0x13ff   :  { %3250 = vmatprep.mubr.msk.bf16.mxu0 %vm3551_vm1, %v3550_v18 }
0x1402   :  { %3245 = vmatmul.mubr.msk.bf16.vlgmr.msra.gmra.mxu1 %vm205_vm2, %v1787_v63 }
0x1403   :  { %3256 = vmatprep.mubr.msk.bf16.mxu1 %vm3551_vm1, %v3550_v18 }
0x14b6   :  { %v4063_v0 = vpop.f32.mrf.mxu0 }
0x14b8   :  { %v3228_v1 = vpop.f32.mrf.mxu0 }
0x14ba   :  { %v1685_v2 = vpop.f32.mrf.mxu0  ;;  %v4065_v3 = vpop.f32.mrf.mxu1 }
0x14bc   :  { %v3229_v4 = vpop.f32.mrf.mxu0  ;;  %v3234_v7 = vpop.f32.mrf.mxu1 }
0x14be   :  { %v1733_v8 = vpop.f32.mrf.mxu1  ;;  %v1780_v9 = vpop.f32.mrf.mxu0 }
0x14bf   :  { %v1781_v10 = vadd.f32 %v4018_v26, %v1780_v9 }
0x14c0   :  { %v3235_v11 = vpop.f32.mrf.mxu1  ;;  %v3240_v13 = vpop.f32.mrf.mxu0 }
0x14c1   :  { %v1836_v14 = vsel %vm205_vm2, %v1781_v10, -inf }
0x14c2   :  { %1837 = vmax.xlane.f32.xlu1 %v1836_v14  ;;  %v1783_v15 = vpop.f32.mrf.mxu0  ;;  %v1830_v17 = vpop.f32.mrf.mxu1 }
0x14c3   :  { %v1831_v19 = vadd.f32 %v4025_v31, %v1830_v17 }
0x14c4   :  { %v3241_v21 = vpop.f32.mrf.mxu0  ;;  %v3246_v22 = vpop.f32.mrf.mxu1 }
0x14c5   :  { %v1839_v25 = vsel %vm205_vm2, %v1831_v19, -inf }
0x14c6   :  { %1840 = vmax.xlane.f32.xlu0 %v1839_v25  ;;  %v1833_v27 = vpop.f32.mrf.mxu1 }
0x14c8   :  { %v3247_v29 = vpop.f32.mrf.mxu1 }
0x14d3   :  { %1860 = vrot.lane.b32.xlu1 %v3995_v12, %s3556_s3 }
0x14d7   :  { %1958 = vrot.lane.b32.xlu1 %v3995_v12, %s3557_s26 }
0x14db   :  { %2008 = vrot.lane.b32.xlu1 %v3999_v16, %s3557_s26 }
0x14df   :  { %1956 = vrot.lane.b32.xlu1 %v3995_v12, %s3558_s27 }
0x154b   :  { %v1838_v32 = vpop.xlane.xlu1 %1837 }
0x154c   :  { %v1842_v28 = vsub.f32 %v1781_v10, %v1838_v32 }
0x154e   :  { %v1844_v30 = vmul.f32 1.442695, %v1842_v28 }
0x154f   :  { %v1861_v33 = vpop.permute.xlu1 %1860  ;;  %v1841_v36 = vpop.xlane.xlu0 %1840 }
0x1550   :  { %3464 = vpow2.f32 %v1844_v30  ;;  %v1866_v37 = vsel %vm329_vm3, %v1861_v33, 0  ;;  %v1843_v38 = vsub.f32 %v1831_v19, %v1841_v36 }
0x1551   :  { %3249 = vmatpush3.bf16.msra.mxu0 %v1866_v37 }
0x1552   :  { %v1846_v39 = vmul.f32 1.442695, %v1843_v38  ;;  %3260 = vmatprep.subr.bf16.mxu0 %v3550_v18 }
0x1553   :  { %v1959_v48 = vpop.permute.xlu1 %1958 }
0x1554   :  { %3466 = vpow2.f32 %v1846_v39  ;;  %v1964_v23 = vsel %vm205_vm2, %v1959_v48, 0 }
0x1557   :  { %v2009_v49 = vpop.permute.xlu1 %2008 }
0x1558   :  { %v2014_v52 = vsel %vm205_vm2, %v2009_v49, 0 }
0x155b   :  { %v1957_v53 = vpop.permute.xlu1 %1956 }
0x155d   :  { %v3465_v40 = vpop.eup %3464 }
0x155e   :  { %v1848_v50 = vsel %vm205_vm2, %v3465_v40, 0.0 }
0x155f   :  { %1849 = vadd.xlane.f32.xlu0 %v1848_v50 }
0x1561   :  { %v3467_v54 = vpop.eup %3466 }
0x1562   :  { %v1851_v42 = vsel %vm205_vm2, %v3467_v54, 0.0 }
0x1563   :  { %1852 = vadd.xlane.f32.xlu0 %v1851_v42 }
0x1579   :  { %1908 = vrot.lane.b32.xlu0 %v3999_v16, %s3556_s3 }
0x157d   :  { %2006 = vrot.lane.b32.xlu0 %v3999_v16, %s3558_s27  ;;  %s4311_s27 = sld [smem:[#allocation11_spill]] }
0x15e8   :  { %v1850_v43 = vpop.xlane.xlu0 %1849 }
0x15e9   :  { %3468 = vrcp.f32 %v1850_v43 }
0x15ec   :  { %v1853_v44 = vpop.xlane.xlu0 %1852 }
0x15ed   :  { %3470 = vrcp.f32 %v1853_v44 }
0x15f0   :  { %v1909_v46 = vpop.permute.xlu0 %1908 }
0x15f1   :  { %v1914_v47 = vsel %vm329_vm3, %v1909_v46, 0 }
0x15f2   :  { %3255 = vmatpush3.bf16.msra.mxu1 %v1914_v47 }
0x15f3   :  { %3266 = vmatprep.subr.bf16.mxu1 %v3550_v18 }
0x15f4   :  { %v2007_v55 = vpop.permute.xlu0 %2006 }
0x15f6   :  { %v3469_v34 = vpop.eup %3468 }
0x15f7   :  { %v1856_v45 = vmul.f32 %v3469_v34, %v3465_v40 }
0x15f9   :  { %v1858_v35 = vpack.c.bf16 %v1856_v45, %v1856_v45 }
0x15fa   :  { %v3471_v20 = vpop.eup %3470 }
0x15fb   :  { %3251 = vmatmul.mubr.msk.bf16.vlgmr.msra.gmra.mxu0 %vm205_vm2, %v1858_v35  ;;  %v1857_v24 = vmul.f32 %v3471_v20, %v3467_v54 }
0x15fc   :  { %3261 = vmatpush3.bf16.xpose.msra.mxu0 %v1964_v23  ;;  %3262 = vmatprep.mubr.msk.bf16.mxu0 %vm3551_vm1, %v3550_v18 }
0x15fd   :  { %v1859_v51 = vpack.c.bf16 %v1857_v24, %v1857_v24  ;;  %3272 = vmatprep.subr.bf16.mxu0 %v3550_v18 }
0x15ff   :  { %3257 = vmatmul.mubr.msk.bf16.vlgmr.msra.gmra.mxu1 %vm205_vm2, %v1859_v51 }
0x1600   :  { %3267 = vmatpush3.bf16.xpose.msra.mxu1 %v2014_v52  ;;  %3268 = vmatprep.mubr.msk.bf16.mxu1 %vm3551_vm1, %v3550_v18 }
0x1601   :  { %3278 = vmatprep.subr.bf16.mxu1 %v3550_v18 }
0x1603   :  { %3263 = vmatmul.mubr.msk.bf16.vlgmr.msra.gmra.mxu0 %vm205_vm2, %v1957_v53 }
0x1604   :  { %3274 = vmatprep.mubr.msk.bf16.mxu0 %vm3551_vm1, %v3550_v18 }
0x1607   :  { %3269 = vmatmul.mubr.msk.bf16.vlgmr.msra.gmra.mxu1 %vm205_vm2, %v2007_v55 }
0x1608   :  { %3280 = vmatprep.mubr.msk.bf16.mxu1 %vm3551_vm1, %v3550_v18 }
0x16bb   :  { %v4105_v56 = vpop.f32.mrf.mxu0 }
0x16bd   :  { %v3252_v57 = vpop.f32.mrf.mxu0 }
0x16bf   :  { %v1905_v58 = vpop.f32.mrf.mxu0  ;;  %v4107_v59 = vpop.f32.mrf.mxu1 }
0x16c0   :  { %v3371_v60 = vpack.i.bf16 %v4107_v59, %v4105_v56 }
0x16c1   :  { %v3253_v41 = vpop.f32.mrf.mxu0  ;;  %v3258_v61 = vpop.f32.mrf.mxu1 }
0x16c3   :  { %v1953_v62 = vpop.f32.mrf.mxu1  ;;  %v2000_v63 = vpop.f32.mrf.mxu0 }
0x16c4   :  { %v2001_v1 = vadd.f32 %v4018_v26, %v2000_v63 }
0x16c5   :  { %v3259_v2 = vpop.f32.mrf.mxu1  ;;  %v3264_v4 = vpop.f32.mrf.mxu0 }
0x16c6   :  { %v2056_v7 = vsel %vm205_vm2, %v2001_v1, -inf }
0x16c7   :  { %2057 = vmax.xlane.f32.xlu1 %v2056_v7  ;;  %v2003_v8 = vpop.f32.mrf.mxu0  ;;  %v2050_v9 = vpop.f32.mrf.mxu1 }
0x16c8   :  { %v2051_v10 = vadd.f32 %v4025_v31, %v2050_v9 }
0x16c9   :  { %v3265_v11 = vpop.f32.mrf.mxu0  ;;  %v3270_v13 = vpop.f32.mrf.mxu1 }
0x16ca   :  { %v2059_v14 = vsel %vm205_vm2, %v2051_v10, -inf }
0x16cb   :  { %2060 = vmax.xlane.f32.xlu0 %v2059_v14  ;;  %v2053_v15 = vpop.f32.mrf.mxu1 }
0x16cd   :  { %v3271_v17 = vpop.f32.mrf.mxu1 }
0x16d8   :  { %2080 = vrot.lane.b32.xlu1 %v3995_v12, %s3559_s28 }
0x16dc   :  { %2178 = vrot.lane.b32.xlu1 %v3995_v12, %s3560_s29 }
0x16e0   :  { %2228 = vrot.lane.b32.xlu1 %v3999_v16, %s3560_s29  ;;  %s4310_s29 = smov 24  }
0x16e4   :  { %2176 = vrot.lane.b32.xlu1 %v3995_v12, %s4306_s1 }
0x1750   :  { %v2058_v19 = vpop.xlane.xlu1 %2057 }
0x1751   :  { %v2062_v21 = vsub.f32 %v2001_v1, %v2058_v19 }
0x1753   :  { %v2064_v22 = vmul.f32 1.442695, %v2062_v21 }
0x1754   :  { %v2081_v25 = vpop.permute.xlu1 %2080  ;;  %v2061_v27 = vpop.xlane.xlu0 %2060 }
0x1755   :  { %3472 = vpow2.f32 %v2064_v22  ;;  %v2086_v29 = vsel %vm329_vm3, %v2081_v25, 0  ;;  %v2063_v32 = vsub.f32 %v2051_v10, %v2061_v27 }
0x1756   :  { %3273 = vmatpush3.bf16.msra.mxu0 %v2086_v29 }
0x1757   :  { %v2066_v28 = vmul.f32 1.442695, %v2063_v32  ;;  %3284 = vmatprep.subr.bf16.mxu0 %v3550_v18 }
0x1758   :  { %v2179_v42 = vpop.permute.xlu1 %2178 }
0x1759   :  { %3474 = vpow2.f32 %v2066_v28  ;;  %v2184_v47 = vsel %vm205_vm2, %v2179_v42, 0 }
0x175c   :  { %v2229_v48 = vpop.permute.xlu1 %2228 }
0x175d   :  { %v2234_v35 = vsel %vm205_vm2, %v2229_v48, 0 }
0x1760   :  { %v2177_v20 = vpop.permute.xlu1 %2176 }
0x1762   :  { %v3473_v30 = vpop.eup %3472 }
0x1763   :  { %v2068_v33 = vsel %vm205_vm2, %v3473_v30, 0.0 }
0x1764   :  { %2069 = vadd.xlane.f32.xlu0 %v2068_v33 }
0x1766   :  { %v3475_v36 = vpop.eup %3474 }
0x1767   :  { %v2071_v37 = vsel %vm205_vm2, %v3475_v36, 0.0 }
0x1768   :  { %2072 = vadd.xlane.f32.xlu0 %v2071_v37 }
0x177e   :  { %2128 = vrot.lane.b32.xlu0 %v3999_v16, %s3559_s28 }
0x1782   :  { %2226 = vrot.lane.b32.xlu0 %v3999_v16, %s4306_s1 }
0x17ed   :  { %v2070_v38 = vpop.xlane.xlu0 %2069 }
0x17ee   :  { %3476 = vrcp.f32 %v2070_v38  ;;  %v3400_v38 = vld [vmem:[%s4276_s8 + $0x18] sm:$0xff]  }
0x17f1   :  { %v2073_v39 = vpop.xlane.xlu0 %2072 }
0x17f2   :  { %3478 = vrcp.f32 %v2073_v39  ;;  %v3401_v39 = vld [vmem:[%s4276_s8 + $0x10] sm:$0xff]  }
0x17f5   :  { %v2129_v40 = vpop.permute.xlu0 %2128 }
0x17f6   :  { %v2134_v50 = vsel %vm329_vm3, %v2129_v40, 0 }
0x17f7   :  { %3279 = vmatpush3.bf16.msra.mxu1 %v2134_v50 }
0x17f8   :  { %3290 = vmatprep.subr.bf16.mxu1 %v3550_v18 }
0x17f9   :  { %v2227_v23 = vpop.permute.xlu0 %2226 }
0x17fb   :  { %v3477_v54 = vpop.eup %3476 }
0x17fc   :  { %v2076_v43 = vmul.f32 %v3477_v54, %v3473_v30 }
0x17fe   :  { %v2078_v44 = vpack.c.bf16 %v2076_v43, %v2076_v43 }
0x17ff   :  { %v3479_v46 = vpop.eup %3478 }
0x1800   :  { %3275 = vmatmul.mubr.msk.bf16.vlgmr.msra.gmra.mxu0 %vm205_vm2, %v2078_v44  ;;  %v2077_v34 = vmul.f32 %v3479_v46, %v3475_v36 }
0x1801   :  { %3285 = vmatpush3.bf16.xpose.msra.mxu0 %v2184_v47  ;;  %3286 = vmatprep.mubr.msk.bf16.mxu0 %vm3551_vm1, %v3550_v18 }
0x1802   :  { %v2079_v45 = vpack.c.bf16 %v2077_v34, %v2077_v34  ;;  %3296 = vmatprep.subr.bf16.mxu0 %v3550_v18 }
0x1804   :  { %3281 = vmatmul.mubr.msk.bf16.vlgmr.msra.gmra.mxu1 %vm205_vm2, %v2079_v45 }
0x1805   :  { %3291 = vmatpush3.bf16.xpose.msra.mxu1 %v2234_v35  ;;  %3292 = vmatprep.mubr.msk.bf16.mxu1 %vm3551_vm1, %v3550_v18 }
0x1806   :  { %3302 = vmatprep.subr.bf16.mxu1 %v3550_v18 }
0x1808   :  { %3287 = vmatmul.mubr.msk.bf16.vlgmr.msra.gmra.mxu0 %vm205_vm2, %v2177_v20 }
0x1809   :  { %3298 = vmatprep.mubr.msk.bf16.mxu0 %vm3551_vm1, %v3550_v18 }
0x180c   :  { %3293 = vmatmul.mubr.msk.bf16.vlgmr.msra.gmra.mxu1 %vm205_vm2, %v2227_v23 }
0x180d   :  { %3304 = vmatprep.mubr.msk.bf16.mxu1 %vm3551_vm1, %v3550_v18 }
0x18c0   :  { %v2122_v24 = vpop.f32.mrf.mxu0 }
0x18c2   :  { %v3276_v49 = vpop.f32.mrf.mxu0 }
0x18c4   :  { %v2125_v51 = vpop.f32.mrf.mxu0  ;;  %v2170_v52 = vpop.f32.mrf.mxu1 }
0x18c6   :  { %v3277_v53 = vpop.f32.mrf.mxu0  ;;  %v3282_v55 = vpop.f32.mrf.mxu1 }
0x18c8   :  { %v2173_v57 = vpop.f32.mrf.mxu1  ;;  %v2220_v58 = vpop.f32.mrf.mxu0 }
0x18c9   :  { %v2221_v41 = vadd.f32 %v4018_v26, %v2220_v58  ;;  %v3376_v26 = vpack.i.bf16 %v2170_v52, %v2122_v24 }
0x18ca   :  { %v3283_v61 = vpop.f32.mrf.mxu1  ;;  %v3288_v62 = vpop.f32.mrf.mxu0 }
0x18cb   :  { %v2276_v63 = vsel %vm205_vm2, %v2221_v41, -inf }
0x18cc   :  { %2277 = vmax.xlane.f32.xlu1 %v2276_v63  ;;  %v2223_v1 = vpop.f32.mrf.mxu0  ;;  %v2270_v2 = vpop.f32.mrf.mxu1 }
0x18cd   :  { %v2271_v4 = vadd.f32 %v4025_v31, %v2270_v2 }
0x18ce   :  { %v3289_v7 = vpop.f32.mrf.mxu0  ;;  %v3294_v8 = vpop.f32.mrf.mxu1 }
0x18cf   :  { %v2279_v9 = vsel %vm205_vm2, %v2271_v4, -inf }
0x18d0   :  { %2280 = vmax.xlane.f32.xlu0 %v2279_v9  ;;  %v2273_v10 = vpop.f32.mrf.mxu1 }
0x18d2   :  { %v3295_v11 = vpop.f32.mrf.mxu1 }
0x18dd   :  { %2300 = vrot.lane.b32.xlu1 %v3995_v12, %s4307_s23 }
0x18e1   :  { %3372 = vrot.lane.b32.xlu1 %v3371_v60, %s4308_s24 }
0x18e5   :  { %3377 = vrot.lane.b32.xlu1 %v3376_v26, %s4309_s25 }
0x1955   :  { %v2278_v13 = vpop.xlane.xlu1 %2277 }
0x1956   :  { %v2282_v31 = vsub.f32 %v2221_v41, %v2278_v13 }
0x1958   :  { %v2284_v14 = vmul.f32 1.442695, %v2282_v31 }
0x1959   :  { %v2301_v15 = vpop.permute.xlu1 %2300  ;;  %v2281_v17 = vpop.xlane.xlu0 %2280 }
0x195a   :  { %3480 = vpow2.f32 %v2284_v14  ;;  %v2306_v19 = vsel %vm329_vm3, %v2301_v15, 0  ;;  %v2283_v21 = vsub.f32 %v2271_v4, %v2281_v17 }
0x195b   :  { %3297 = vmatpush3.bf16.msra.mxu0 %v2306_v19 }
0x195c   :  { %v2286_v22 = vmul.f32 1.442695, %v2283_v21  ;;  %3308 = vmatprep.subr.bf16.mxu0 %v3550_v18 }
0x195d   :  { %v3373_v48 = vpop.permute.xlu1 %3372 }
0x195e   :  { %3482 = vpow2.f32 %v2286_v22  ;;  %v3375_v35 = vunpack.i.h.bf16 %v3373_v48  ;;  %v3374_v20 = vunpack.i.l.bf16 %v3373_v48 }
0x1960   :  { %v2421_v51 = vsel %vm205_vm2, %v4065_v3, %v3375_v35  ;;  %v2420_v52 = vsel %vm205_vm2, %v4063_v0, %v3374_v20  ;;  %v2940_v0 = vld [vmem:[%s4277_s9 + $0x1] ss:$0 sm:$0xff] }
0x1961   :  { %v3378_v45 = vpop.permute.xlu1 %3377 }
0x1962   :  { %v3380_v23 = vunpack.i.h.bf16 %v3378_v45  ;;  %v3379_v24 = vunpack.i.l.bf16 %v3378_v45 }
0x1964   :  { %v2423_v57 = vsel %vm1107_vm4, %v2421_v51, %v3380_v23  ;;  %v2422_v58 = vsel %vm1107_vm4, %v2420_v52, %v3379_v24 }
0x1967   :  { %v3481_v12 = vpop.eup %3480 }
0x1968   :  { %v2288_v56 = vsel %vm205_vm2, %v3481_v12, 0.0 }
0x1969   :  { %2289 = vadd.xlane.f32.xlu0 %v2288_v56 }
0x196b   :  { %v3483_v59 = vpop.eup %3482 }
0x196c   :  { %v2291_v60 = vsel %vm205_vm2, %v3483_v59, 0.0 }
0x196d   :  { %2292 = vadd.xlane.f32.xlu0 %v2291_v60 }
0x1983   :  { %2348 = vrot.lane.b32.xlu0 %v3999_v16, %s4307_s23 }
0x19f2   :  { %v2290_v25 = vpop.xlane.xlu0 %2289 }
0x19f3   :  { %3484 = vrcp.f32 %v2290_v25 }
0x19f6   :  { %v2293_v27 = vpop.xlane.xlu0 %2292 }
0x19f7   :  { %3486 = vrcp.f32 %v2293_v27 }
0x19fa   :  { %v2349_v29 = vpop.permute.xlu0 %2348 }
0x19fb   :  { %v2354_v32 = vsel %vm329_vm3, %v2349_v29, 0 }
0x19fc   :  { %3303 = vmatpush3.bf16.msra.mxu1 %v2354_v32 }
0x19fd   :  { %3316 = vmatprep.subr.bf16.mxu1 %v3550_v18 }
0x1a00   :  { %v3485_v28 = vpop.eup %3484 }
0x1a01   :  { %v2296_v30 = vmul.f32 %v3485_v28, %v3481_v12  ;;  %v3403_v12 = vld [vmem:[%s4280_s12 + $0x10] sm:$0xff]  }
0x1a03   :  { %v2298_v33 = vpack.c.bf16 %v2296_v30, %v2296_v30  ;;  %v2946_v30 = vld [vmem:[%s4278_s10 + $0x1] ss:$0 sm:$0xff] }
0x1a04   :  { %v3487_v36 = vpop.eup %3486 }
0x1a05   :  { %3299 = vmatmul.mubr.msk.bf16.vlgmr.msra.gmra.mxu0 %vm205_vm2, %v2298_v33  ;;  %v2297_v37 = vmul.f32 %v3487_v36, %v3483_v59 }
0x1a06   :  { %3312 = vmatprep.mubr.msk.bf16.mxu0 %vm3551_vm1, %v3550_v18  ;;  %3309 = vmatpush3.bf16.msra.mxu0 %v3400_v38 }
0x1a07   :  { %v2299_v16 = vpack.c.bf16 %v2297_v37, %v2297_v37  ;;  %3310 = vmatprep.subr.bf16.mxu0 %v3550_v18 }
0x1a09   :  { %3305 = vmatmul.mubr.msk.bf16.vlgmr.msra.gmra.mxu1 %vm205_vm2, %v2299_v16  ;;  %v2947_v16 = vld [vmem:[%s4279_s11 + $0x1] ss:$0 sm:$0xff] }
0x1a0a   :  { %3320 = vmatprep.mubr.msk.bf16.mxu1 %vm3551_vm1, %v3550_v18  ;;  %3311 = vmatpush3.bf16.msra.mxu0 %v3401_v39 }
0x1a0b   :  { %3324 = vmatprep.subr.bf16.mxu0 %v3550_v18 }
0x1ac5   :  { %v2342_v40 = vpop.f32.mrf.mxu0 }
0x1ac7   :  { %v3300_v50 = vpop.f32.mrf.mxu0 }
0x1ac9   :  { %v2345_v54 = vpop.f32.mrf.mxu0  ;;  %v2390_v42 = vpop.f32.mrf.mxu1 }
0x1aca   :  { %v3381_v43 = vpack.i.bf16 %v2390_v42, %v2342_v40  ;;  %v3404_v54 = vld [vmem:[%s4282_s14 + $0x38] sm:$0xff]   ;;  %v3405_v42 = vld [vmem:[%s4282_s14 + $0x30] sm:$0xff]  }
0x1acb   :  { %v3301_v44 = vpop.f32.mrf.mxu0  ;;  %v3306_v46 = vpop.f32.mrf.mxu1 }
0x1acc   :  { %3382 = vrot.lane.b32.xlu1 %v3381_v43, %s4310_s29  ;;  %v3406_v43 = vld [vmem:[%s4282_s14 + $0x28] sm:$0xff]   ;;  %v3407_v44 = vld [vmem:[%s4282_s14 + $0x20] sm:$0xff]  }
0x1acd   :  { %v2393_v47 = vpop.f32.mrf.mxu1  ;;  %v2953_v46 = vld [vmem:[%s4281_s13 + $0x1] ss:$0 sm:$0xff] }
0x1acf   :  { %v3307_v34 = vpop.f32.mrf.mxu1 }
0x1b3e   :  { %v3383_v49 = vpop.permute.xlu1 %3382 }
0x1b3f   :  { %v3385_v53 = vunpack.i.h.bf16 %v3383_v49  ;;  %v3384_v55 = vunpack.i.l.bf16 %v3383_v49 }
0x1b41   :  { %v2425_v41 = vsel %vm1110_vm5, %v2423_v57, %v3385_v53  ;;  %v2424_v61 = vsel %vm1110_vm5, %v2422_v58, %v3384_v55 }
0x1b42   :  { %v2426_v62 = vpack.c.bf16 %v2425_v41, %v2424_v61 }
0x1b44   :  { %3313 = vmatmul.mubr.msk.bf16.vlgmr.msra.gmra.mxu0 %vm71_vm0, %v2426_v62 }
0x1b45   :  { %3332 = vmatprep.mubr.msk.bf16.mxu0 %vm3551_vm1, %v3550_v18  ;;  %3325 = vmatpush3.bf16.msra.mxu0 %v3404_v54 }
0x1b46   :  { %3326 = vmatprep.subr.bf16.mxu0 %v3550_v18 }
0x1b49   :  { %3327 = vmatpush3.bf16.msra.mxu0 %v3405_v42 }
0x1b4a   :  { %3328 = vmatprep.subr.bf16.mxu0 %v3550_v18 }
0x1b4d   :  { %3329 = vmatpush3.bf16.msra.mxu0 %v3406_v43 }
0x1b4e   :  { %3330 = vmatprep.subr.bf16.mxu0 %v3550_v18 }
0x1b51   :  { %3331 = vmatpush3.bf16.msra.mxu0 %v3407_v44 }
0x1c04   :  { %v2489_v3 = vpop.f32.mrf.mxu0 }
0x1c05   :  { %v2490_v63 = vadd.f32 %v2940_v0, %v2489_v3 }
0x1c06   :  { %v3314_v1 = vpop.f32.mrf.mxu0 }
0x1c07   :  { %v2496_v2 = vadd.f32 %v2490_v63, %v3983_v5 }
0x1c08   :  { %v2492_v4 = vpop.f32.mrf.mxu0 }
0x1c09   :  { %v2493_v7 = vadd.f32 %v2940_v0, %v2492_v4  ;;  %v2502_v8 = vsel %vm71_vm0, %v2496_v2, 0.0 }
0x1c0a   :  { %2503 = vadd.xlane.f32.xlu0 %v2502_v8  ;;  %v3315_v9 = vpop.f32.mrf.mxu0  ;;  %v2768_v8 = vld [vmem:[%s4311_s27] sm:$0xff] }
0x1c0b   :  { %v2497_v10 = vadd.f32 %v2493_v7, %v3985_v6  ;;  %v3402_v6 = vld [vmem:[%s4280_s12 + $0x18] sm:$0xff]   ;;  %v3566_v7 = vmov 0   ;;  %v2966_v9 = vld [vmem:[%s4283_s15 + $0x1] ss:$0 sm:$0xff] }
0x1c0c   :  { %3317 = vmatpush3.bf16.msra.mxu1 %v3402_v6  ;;  %3387 = vset.pattern.permute.xlu1 %v3566_v7 }
0x1c0d   :  { %v2505_v11 = vsel %vm71_vm0, %v2497_v10, 0.0  ;;  %3318 = vmatprep.subr.bf16.mxu1 %v3550_v18  ;;  %3386 = vset.pattern.permute.xlu0 %v3566_v7 }
0x1c0e   :  { %2506 = vadd.xlane.f32.xlu1 %v2505_v11  ;;  %v2797_v11 = vsel %vm2796_vm7, %v2768_v8, 0.0 }
0x1c10   :  { %3319 = vmatpush3.bf16.msra.mxu1 %v3403_v12 }
0x1c93   :  { %v2504_v26 = vpop.xlane.xlu0 %2503 }
0x1c94   :  { %v2508_v13 = vmul.f32 0.03125, %v2504_v26 }
0x1c96   :  { %v2510_v31 = vsub.f32 %v2496_v2, %v2508_v13 }
0x1c97   :  { %v2507_v14 = vpop.xlane.xlu1 %2506 }
0x1c98   :  { %v2509_v15 = vmul.f32 0.03125, %v2507_v14  ;;  %v2512_v17 = vmul.f32 %v2510_v31, %v2510_v31  ;;  %v2798_v14 = vrot.slane %v2797_v11, 4 }
0x1c9a   :  { %v2511_v19 = vsub.f32 %v2497_v10, %v2509_v15  ;;  %v2514_v5 = vsel %vm71_vm0, %v2512_v17, 0.0 }
0x1c9b   :  { %2515 = vadd.xlane.f32.xlu0 %v2514_v5 }
0x1c9c   :  { %v2513_v21 = vmul.f32 %v2511_v19, %v2511_v19 }
0x1c9e   :  { %v2517_v22 = vsel %vm71_vm0, %v2513_v21, 0.0 }
0x1c9f   :  { %2518 = vadd.xlane.f32.xlu0 %v2517_v22  ;;  %v2799_v22 = vadd.f32 %v2798_v14, %v2797_v11 }
0x1ca1   :  { %v2800_v12 = vrot.slane %v2799_v22, 2 }
0x1d24   :  { %v2516_v56 = vpop.xlane.xlu0 %2515 }
0x1d25   :  { %v2520_v59 = vmul.f32 0.03125, %v2516_v56  ;;  %v2801_v56 = vadd.f32 %v2800_v12, %v2799_v22 }
0x1d27   :  { %v2522_v60 = vadd.f32 1e-12, %v2520_v59  ;;  %v2802_v59 = vrot.slane %v2801_v56, 1 }
0x1d28   :  { %v2519_v25 = vpop.xlane.xlu0 %2518 }
0x1d29   :  { %3488 = vrsqrt.f32 %v2522_v60  ;;  %v2521_v27 = vmul.f32 0.03125, %v2519_v25  ;;  %v2803_v60 = vadd.f32 %v2802_v59, %v2801_v56  ;;  %v2769_v25 = vld [vmem:[%s4311_s27 + $0x8] sm:$0xff] }
0x1d2b   :  { %v2523_v29 = vadd.f32 1e-12, %v2521_v27  ;;  %v2811_v27 = vmax.f32 %v2803_v60, 1e-09 }
0x1d2d   :  { %3490 = vrsqrt.f32 %v2523_v29  ;;  %v2804_v29 = vsel %vm2796_vm7, %v2769_v25, 0.0 }
0x1d36   :  { %v3489_v32 = vpop.eup %3488 }
0x1d37   :  { %v2526_v28 = vmul.f32 %v3489_v32, %v2510_v31 }
0x1d39   :  { %v2534_v37 = vmul.f32 %v2946_v30, %v2526_v28  ;;  %v2805_v28 = vrot.slane %v2804_v29, 4 }
0x1d3a   :  { %v3491_v33 = vpop.eup %3490 }
0x1d3b   :  { %v2527_v36 = vmul.f32 %v3491_v33, %v2511_v19  ;;  %v2542_v39 = vadd.f32 %v2947_v16, %v2534_v37  ;;  %v2806_v37 = vadd.f32 %v2805_v28, %v2804_v29 }
0x1d3d   :  { %v2535_v38 = vmul.f32 %v2946_v30, %v2527_v36 }
0x1d3f   :  { %v2543_v40 = vadd.f32 %v2947_v16, %v2535_v38 }
0x1d41   :  { %v2544_v50 = vpack.c.bf16 %v2543_v40, %v2542_v39 }
0x1d43   :  { %3321 = vmatmul.mubr.msk.bf16.vlgmr.msra.gmra.mxu1 %vm71_vm0, %v2544_v50  ;;  %v2807_v50 = vrot.slane %v2806_v37, 2 }
0x1d45   :  { %v2808_v43 = vadd.f32 %v2807_v50, %v2806_v37 }
0x1d47   :  { %v2809_v44 = vrot.slane %v2808_v43, 1 }
0x1e03   :  { %v2607_v47 = vpop.f32.mrf.mxu1 }
0x1e04   :  { %v2608_v34 = vadd.f32 %v2953_v46, %v2607_v47 }
0x1e05   :  { %v3322_v48 = vpop.f32.mrf.mxu1 }
0x1e06   :  { %v2614_v45 = vmul.f32 %v2608_v34, %v2608_v34 }
0x1e07   :  { %v2610_v35 = vpop.f32.mrf.mxu1 }
0x1e08   :  { %v2616_v20 = vmul.f32 %v2614_v45, %v2608_v34  ;;  %v2611_v23 = vadd.f32 %v2953_v46, %v2610_v35  ;;  %v2810_v46 = vadd.f32 %v2809_v44, %v2808_v43 }
0x1e09   :  { %v3323_v24 = vpop.f32.mrf.mxu1 }
0x1e0a   :  { %v2618_v49 = vmul.f32 0.044715, %v2616_v20  ;;  %v2615_v51 = vmul.f32 %v2611_v23, %v2611_v23  ;;  %v2812_v47 = vmax.f32 %v2810_v46, 1e-09 }
0x1e0c   :  { %v2620_v18 = vadd.f32 %v2618_v49, %v2608_v34  ;;  %v2617_v52 = vmul.f32 %v2615_v51, %v2611_v23 }
0x1e0e   :  { %v2622_v53 = vmul.f32 0.7978846, %v2620_v18  ;;  %v2619_v55 = vmul.f32 0.044715, %v2617_v52  ;;  %v2974_v18 = vld [vmem:[%s4284_s16 + $0x1] ss:$0 sm:$0xff] }
0x1e0f   :  { %s3506_s16 = scalar_lea.vmem %s2840_s20, 256 }
0x1e10   :  { %3492 = vtanh.f32 %v2622_v53  ;;  %v2621_v57 = vadd.f32 %v2619_v55, %v2611_v23  ;;  %v2975_v53 = vld [vmem:[%s4285_s17 + $0x1] ss:$0 sm:$0xff]  ;;  %p3507_p0 = scmp.ne.s32.totalorder %s2840_s20, %s3506_s16  ;;  %p3512_p2 = scmp.lt.s32.totalorder %s3506_s16, %s3506_s16 }
0x1e12   :  { %v2623_v58 = vmul.f32 0.7978846, %v2621_v57  ;;  %p3513_p3 = por %p3512_p2, %p3511_p1 }
0x1e14   :  { %3494 = vtanh.f32 %v2623_v58  ;;  %p3514_p4 = pnand %p3513_p3, %p3507_p0 }
0x1e1d   :  { %v3493_v41 = vpop.eup %3492 }
0x1e1e   :  { %v2626_v61 = vadd.f32 1.0, %v3493_v41 }
0x1e20   :  { %v2628_v0 = vmul.f32 0.5, %v2626_v61 }
0x1e21   :  { %v3495_v62 = vpop.eup %3494 }
0x1e22   :  { %v2627_v3 = vadd.f32 1.0, %v3495_v62  ;;  %v2630_v1 = vmul.f32 %v2628_v0, %v2608_v34 }
0x1e24   :  { %v2629_v63 = vmul.f32 0.5, %v2627_v3 }
0x1e26   :  { %v2631_v2 = vmul.f32 %v2629_v63, %v2611_v23 }
0x1e28   :  { %v2632_v4 = vpack.c.bf16 %v2631_v2, %v2630_v1 }
0x1e2a   :  { %3333 = vmatmul.mubr.msk.bf16.vlgmr.msra.gmra.mxu0 %vm1353_vm6, %v2632_v4 }
0x1eea   :  { %v2711_v10 = vpop.f32.mrf.mxu0 }
0x1eeb   :  { %v2712_v26 = vadd.f32 %v2966_v9, %v2711_v10 }
0x1eec   :  { %v3334_v13 = vpop.f32.mrf.mxu0 }
0x1eed   :  { %v2718_v31 = vadd.f32 %v2712_v26, %v2542_v39 }
0x1eee   :  { %v2714_v15 = vpop.f32.mrf.mxu0 }
0x1eef   :  { %v2715_v17 = vadd.f32 %v2966_v9, %v2714_v15  ;;  %v2724_v19 = vsel %vm71_vm0, %v2718_v31, 0.0 }
0x1ef0   :  { %2725 = vadd.xlane.f32.xlu0 %v2724_v19  ;;  %v3335_v5 = vpop.f32.mrf.mxu0 }
0x1ef1   :  { %v2719_v21 = vadd.f32 %v2715_v17, %v2543_v40 }
0x1ef3   :  { %v2727_v6 = vsel %vm71_vm0, %v2719_v21, 0.0 }
0x1ef4   :  { %2728 = vadd.xlane.f32.xlu1 %v2727_v6 }
0x1f05   :  { %2777 = vperm.xlu1 %3387, %v2769_v25  }
0x1f09   :  { %2815 = vperm.xlu1 %3387, %v2811_v27  }
0x1f79   :  { %v2726_v32 = vpop.xlane.xlu0 %2725 }
0x1f7a   :  { %v2730_v30 = vmul.f32 0.03125, %v2726_v32 }
0x1f7c   :  { %v2732_v33 = vsub.f32 %v2718_v31, %v2730_v30 }
0x1f7d   :  { %v2729_v36 = vpop.xlane.xlu1 %2728 }
0x1f7e   :  { %v2731_v16 = vmul.f32 0.03125, %v2729_v36  ;;  %v2734_v38 = vmul.f32 %v2732_v33, %v2732_v33 }
0x1f80   :  { %v2733_v39 = vsub.f32 %v2719_v21, %v2731_v16  ;;  %v2736_v40 = vsel %vm71_vm0, %v2734_v38, 0.0 }
0x1f81   :  { %2737 = vadd.xlane.f32.xlu0 %v2736_v40  ;;  %v2778_v34 = vpop.permute.xlu1 %2777 }
0x1f82   :  { %v2735_v54 = vmul.f32 %v2733_v39, %v2733_v39 }
0x1f84   :  { %v2739_v42 = vsel %vm71_vm0, %v2735_v54, 0.0 }
0x1f85   :  { %2740 = vadd.xlane.f32.xlu1 %v2739_v42  ;;  %v2816_v48 = vpop.permute.xlu1 %2815 }
0x1f96   :  { %2820 = vperm.xlu1 %3387, %v2812_v47  }
0x1f97   :  { %2772 = vperm.xlu0 %3386, %v2768_v8  }
0x200a   :  { %v2738_v45 = vpop.xlane.xlu0 %2737 }
0x200b   :  { %v2742_v35 = vmul.f32 0.03125, %v2738_v45 }
0x200d   :  { %v2744_v20 = vadd.f32 1e-12, %v2742_v35 }
0x200e   :  { %v2741_v23 = vpop.xlane.xlu1 %2740 }
0x200f   :  { %3496 = vrsqrt.f32 %v2744_v20  ;;  %v2743_v24 = vmul.f32 0.03125, %v2741_v23 }
0x2011   :  { %v2745_v49 = vadd.f32 1e-12, %v2743_v24 }
0x2012   :  { %v2773_v58 = vpop.permute.xlu0 %2772  ;;  %v2821_v3 = vpop.permute.xlu1 %2820 }
0x2013   :  { %3498 = vrsqrt.f32 %v2745_v49 }
0x2014   :  { %3500 = vrcp.f32 %v2816_v48 }
0x2015   :  { %3502 = vrcp.f32 %v2821_v3 }
0x201c   :  { %v3497_v51 = vpop.eup %3496 }
0x201d   :  { %v2748_v52 = vmul.f32 %v3497_v51, %v2732_v33 }
0x201f   :  { %v2756_v55 = vmul.f32 %v2974_v18, %v2748_v52 }
0x2020   :  { %v3499_v57 = vpop.eup %3498 }
0x2021   :  { %v2764_v41 = vadd.f32 %v2975_v53, %v2756_v55  ;;  %v2749_v61 = vmul.f32 %v3499_v57, %v2733_v39 }
0x2023   :  { %2766 = vst.msk [vmem:[#allocation2] sm:$0xff] %vm71_vm0, %v2764_v41  ;;  %v2757_v62 = vmul.f32 %v2974_v18, %v2749_v61  ;;  %v2780_v0 = vmul.f32 %v2773_v58, %v2764_v41 }
0x2025   :  { %v2765_v63 = vadd.f32 %v2975_v53, %v2757_v62  ;;  %v2782_v1 = vsel %vm71_vm0, %v2780_v0, 0.0 }
0x2026   :  { %v2783_v2 = vrot.slane %v2782_v1, 4 }
0x2027   :  { %v2781_v4 = vmul.f32 %v2778_v34, %v2765_v63  ;;  %2767 = vst.msk [vmem:[#allocation2 + $0x8] sm:$0xff] %vm71_vm0, %v2765_v63 }
0x2028   :  { %v2784_v7 = vadd.f32 %v2783_v2, %v2782_v1 }
0x2029   :  { %3517 = shalt.err (!%p3514_p4)
}
0x202a   :  { %s3568_s17 = smov 128   ;;  %v2789_v8 = vsel %vm71_vm0, %v2781_v4, 0.0  ;;  %v2785_v9 = vrot.slane %v2784_v7, 2  ;;  %v3501_v19 = vpop.eup %3500  ;;  %s3569_s7 = smov [#allocation4]   ;;  %vm2829_vm8 = vcmask 1041409   ;;  %vm2832_vm9 = vcmask 254976  }
0x202b   :  { %2845 = dma.vmem_to_hbm [thread:$0]  %s2840_s20, 256, %s4286_s18, [#allocation3], %s3568_s17, %s3568_s17, %s4308_s24   ;;  %v2790_v10 = vrot.slane %v2789_v8, 4  ;;  %v3503_v21 = vpop.eup %3502 }
0x202c   :  { %v2786_v11 = vadd.f32 %v2785_v9, %v2784_v7  ;;  %s2852_s5 = sshll.u32 %s3569_s7, 4  ;;  %s2853_s5 = int_to_ptr.vmem [resolvable:$true] %s2852_s5 }
0x202d   :  { %v2791_v26 = vadd.f32 %v2790_v10, %v2789_v8  ;;  %s3526_s18 = scalar_lea.vmem %s2853_s5, 32  ;;  %p3531_p6 = scmp.lt.s32.totalorder %s2853_s5, %s2853_s5 }
0x202e   :  { %v2787_v13 = vrot.slane %v2786_v11, 1  ;;  %p3527_p5 = scmp.ne.s32.totalorder %s2853_s5, %s3526_s18  ;;  %p3532_p7 = scmp.lt.s32.totalorder %s3526_s18, %s3526_s18 }
0x202f   :  { %v2792_v31 = vrot.slane %v2791_v26, 2 }
0x2030   :  { %v2788_v15 = vadd.f32 %v2787_v13, %v2786_v11  ;;  %p3533_p8 = por %p3532_p7, %p3531_p6 }
0x2031   :  { %v2793_v14 = vadd.f32 %v2792_v31, %v2791_v26 }
0x2032   :  { %v2824_v22 = vmul.f32 %v3501_v19, %v2788_v15  ;;  %p3534_p9 = pnand %p3533_p8, %p3527_p5 }
0x2033   :  { %v2794_v17 = vrot.slane %v2793_v14, 1 }
0x2035   :  { %v2795_v5 = vadd.f32 %v2794_v17, %v2793_v14 }
0x2037   :  { %v2826_v6 = vmul.f32 %v3503_v21, %v2795_v5 }
0x2039   :  { %v2830_v12 = vsel %vm2829_vm8, %v2826_v6, %v2824_v22 }
0x203a   :  { %2833 = vst.msk [vmem:[#allocation4] sm:$0x3] %vm2832_vm9, %v2830_v12 }
0x203b   :  { %3537 = shalt.err (!%p3534_p9)
}
0x203c   :  { %2855 = dma.vmem_to_hbm [thread:$0]  %s2853_s5, 32, %s4287_s19, [#allocation5]  }
0x203d   :  { %3546 = dma.done.wait [#allocation3], 256  }
0x203e   :  { %3547 = vsyncadd [#allocation3], 4294967040 }
0x203f   :  { %3548 = dma.done.wait [#allocation5], 32  }
0x2040   :  { %3549 = vsyncadd [#allocation5], 4294967264 }
0x2041   :  { %2862 = vsyncpa [#allocation3], 1 }
0x2042   :  { %2863 = vsyncpa [#allocation5], 1 }

</bundles_post_ra>
